<compile_context>
chip_gen: v7x
topology: tpu7x:2x2x1
jax: 0.10.0
libtpu: 0.0.40
codegen_flags: <defaults>
</compile_context>

<pallas_src>
import functools

import jax
import jax.numpy as jnp
from jax.experimental import pallas as pl
from jax.experimental.pallas import tpu as pltpu

_LANE = 128
_TARGET_PIXELS_PER_STEP = 512   # output rows*cols per grid step (safe for v7x 64MiB VMEM)


def _round_up(x, m):
    return ((x + m - 1) // m) * m


def _fit(x, axis, size):
    """Zero-pad or crop `x` along `axis` to exactly `size`."""
    cur = x.shape[axis]
    if cur < size:
        pads = [(0, 0)] * x.ndim
        pads[axis] = (0, size - cur)
        return jnp.pad(x, pads)
    if cur > size:
        return jax.lax.slice_in_dim(x, 0, size, axis=axis)
    return x


# ----------------------------------------------------------------------------
# Pallas kernel: multi-tap (shift-and-accumulate) conv + bias + ReLU
# ----------------------------------------------------------------------------
def _make_tap_conv_kernel(KH, KW, TR, OW, Ct, Coutp):
    def kernel(x_ref, w_ref, b_ref, o_ref):
        # x_ref: (1, Ht, Wt, Ct)      full padded image for this batch element
        # w_ref: (KH*KW, Ct, Coutp)   per-tap weight matrices (bf16)
        # b_ref: (1, Coutp)           bias row (f32)
        # o_ref: (1, TR, OW, Coutp)   output row tile (bf16, lane dense)
        rt = pl.program_id(1)
        row0 = rt * TR
        acc = jnp.zeros((TR * OW, Coutp), jnp.float32)
        for kh in range(KH):
            for kw in range(KW):
                xs = x_ref[0, pl.ds(row0 + kh, TR), pl.ds(kw, OW), :]   # (TR, OW, Ct)
                acc = acc + jnp.dot(xs.reshape(TR * OW, Ct),
                                    w_ref[kh * KW + kw],
                                    preferred_element_type=jnp.float32)
        acc = jnp.maximum(acc + b_ref[...], 0.0)
        o_ref[...] = acc.reshape(1, TR, OW, Coutp).astype(o_ref.dtype)
    return kernel


def _tap_conv_relu(x_taps, w_taps, b_row, KH, KW, OH, OW):
    """out[n,i,j,:] = relu(b + sum_{kh,kw} x_taps[n,i+kh,j+kw,:] @ w_taps[kh*KW+kw])."""
    N = x_taps.shape[0]
    Ct = x_taps.shape[-1]
    Coutp = w_taps.shape[-1]

    TR = max(1, min(OH, _TARGET_PIXELS_PER_STEP // max(OW, 1)))
    n_rt = -(-OH // TR)
    OH_pad = n_rt * TR

    # Kernel reads rows [0, OH_pad+KH-1) and cols [0, OW+KW-1).
    x_taps = _fit(x_taps, 1, OH_pad + KH - 1)
    x_taps = _fit(x_taps, 2, OW + KW - 1)
    _, Ht, Wt, _ = x_taps.shape

    # TODO(synk): for very large feature maps the full-image input block should
    # become a manually DMA'd row band with a halo (memory_space=pl.ANY).
    out = pl.pallas_call(
        _make_tap_conv_kernel(KH, KW, TR, OW, Ct, Coutp),
        out_shape=jax.ShapeDtypeStruct((N, OH_pad, OW, Coutp), jnp.bfloat16),
        grid=(N, n_rt),
        in_specs=[
            # padded image for this batch element (reused across row tiles)
            pl.BlockSpec((1, Ht, Wt, Ct), lambda n, rt: (n, 0, 0, 0)),
            # full weight + bias, resident across the whole grid
            pl.BlockSpec((KH * KW, Ct, Coutp), lambda n, rt: (0, 0, 0)),
            pl.BlockSpec((1, Coutp), lambda n, rt: (0, 0)),
        ],
        out_specs=pl.BlockSpec((1, TR, OW, Coutp), lambda n, rt: (n, rt, 0, 0)),
        compiler_params=pltpu.CompilerParams(
            dimension_semantics=("parallel", "parallel"),
            vmem_limit_bytes=48 * 1024 * 1024),
    )(x_taps, w_taps, b_row)
    return out  # (N, OH_pad, OW, Coutp) bf16


# ----------------------------------------------------------------------------
# Layer wrappers (glue: padding / space-to-depth, all same-size XLA copies)
# ----------------------------------------------------------------------------
def _conv_layer_stride1(x_nhwc, w_taps, b_row, cout):
    """3x3, stride 1, pad 1 conv + ReLU."""
    _, H, W, _ = x_nhwc.shape
    xp = jnp.pad(x_nhwc, ((0, 0), (1, 1), (1, 1), (0, 0))).astype(jnp.bfloat16)
    out = _tap_conv_relu(xp, w_taps, b_row, 3, 3, H, W)
    return out[:, :H, :, :cout]


def _conv_layer_stride2(x_nhwc, w_taps, b_row, cout):
    """3x3, stride 2, pad 1 conv + ReLU via space-to-depth -> 2x2-tap stride-1 conv."""
    N, H, W, C = x_nhwc.shape
    OH = (H - 1) // 2 + 1
    OW = (W - 1) // 2 + 1
    xp = jnp.pad(x_nhwc, ((0, 0), (1, 1), (1, 1), (0, 0)))
    Hp, Wp = H + 2, W + 2
    Hp_e, Wp_e = _round_up(Hp, 2), _round_up(Wp, 2)
    xp = jnp.pad(xp, ((0, 0), (0, Hp_e - Hp), (0, Wp_e - Wp), (0, 0)))
    # space-to-depth: xs2d[n,i,j, p*2C + q*C + c] = xp[n, 2i+p, 2j+q, c]
    xs2d = xp.reshape(N, Hp_e // 2, 2, Wp_e // 2, 2, C)
    xs2d = jnp.transpose(xs2d, (0, 1, 3, 2, 4, 5)).reshape(
        N, Hp_e // 2, Wp_e // 2, 4 * C).astype(jnp.bfloat16)
    out = _tap_conv_relu(xs2d, w_taps, b_row, 2, 2, OH, OW)
    return out[:, :OH, :, :cout]


# ----------------------------------------------------------------------------
# Parameters (PyTorch-style init) + weight repacking for the kernels
# ----------------------------------------------------------------------------
def _repack_weight_stride1(w_pt, coutp):
    # w_pt: (Cout, Cin, 3, 3) -> (9, Cin, Coutp), tap index = kh*3 + kw
    cout, cin = w_pt.shape[0], w_pt.shape[1]
    w = jnp.transpose(w_pt, (2, 3, 1, 0)).reshape(9, cin, cout)
    return jnp.pad(w, ((0, 0), (0, 0), (0, coutp - cout)))


def _repack_weight_stride2(w_pt, coutp):
    # Space-to-depth form: tap (a,b) on the s2d grid, input channel = p*2C+q*C+c,
    # weight = w_pt[:, :, 2a+p, 2b+q] (zero where the 3x3 window does not reach).
    cout, cin = w_pt.shape[0], w_pt.shape[1]
    wt = jnp.transpose(w_pt, (2, 3, 1, 0))                 # (kh, kw, cin, cout)
    w = jnp.zeros((2, 2, 2, 2, cin, cout), w_pt.dtype)     # [a, b, p, q, c, o]
    for a in range(2):
        for bb in range(2):
            for p in range(2):
                for q in range(2):
                    kh, kw = 2 * a + p, 2 * bb + q
                    if kh < 3 and kw < 3:
                        w = w.at[a, bb, p, q].set(wt[kh, kw])
    w = w.reshape(4, 4 * cin, cout)                        # tap = a*2+b
    return jnp.pad(w, ((0, 0), (0, 0), (0, coutp - cout)))


def init_downblock_raw(key, in_channels, out_channels, n_layers_in_block, bias=True):
    """PyTorch-layout Conv2d params: list of (weight (O,I,3,3), bias (O,)) in f32."""
    raw = []
    cin = in_channels
    for _ in range(n_layers_in_block):
        key, kw_key, kb_key = jax.random.split(key, 3)
        fan_in = cin * 9
        bound = 1.0 / (fan_in ** 0.5)
        w = jax.random.uniform(kw_key, (out_channels, cin, 3, 3),
                               minval=-bound, maxval=bound, dtype=jnp.float32)
        b = (jax.random.uniform(kb_key, (out_channels,),
                                minval=-bound, maxval=bound, dtype=jnp.float32)
             if bias else jnp.zeros((out_channels,), jnp.float32))
        raw.append((w, b))
        cin = out_channels
    return raw


def pack_downblock_params(raw):
    """Repack raw weights for the Pallas kernels (bf16 taps, Cout padded to 128)."""
    out_channels = raw[0][0].shape[0]
    coutp = _round_up(out_channels, _LANE)
    params = []
    for layer, (w_pt, b) in enumerate(raw):
        w_taps = (_repack_weight_stride2(w_pt, coutp) if layer == 0
                  else _repack_weight_stride1(w_pt, coutp))
        b_row = jnp.pad(b, (0, coutp - b.shape[0])).reshape(1, coutp).astype(jnp.float32)
        params.append({"w": w_taps.astype(jnp.bfloat16), "b": b_row})
    return params


@functools.partial(jax.jit, static_argnames=("out_channels",))
def downblock_forward(x_nchw, params, *, out_channels):
    # TODO(synk): layers still round-trip activations through HBM between
    # pallas_calls; a fully fused multi-layer kernel would remove that for
    # small feature maps (perf only, not correctness).
    x = jnp.transpose(x_nchw, (0, 2, 3, 1))                 # NCHW -> NHWC
    for idx, p in enumerate(params):
        if idx == 0:
            x = _conv_layer_stride2(x, p["w"], p["b"], out_channels)
        else:
            x = _conv_layer_stride1(x, p["w"], p["b"], out_channels)
    return jnp.transpose(x, (0, 3, 1, 2)).astype(jnp.float32)   # NHWC -> NCHW


# ----------------------------------------------------------------------------
# Plain-JAX reference (for numerical sanity check)
# ----------------------------------------------------------------------------
def _reference_forward(x_nchw, raw):
    y = x_nchw
    for idx, (w, b) in enumerate(raw):
        stride = (2, 2) if idx == 0 else (1, 1)
        y = jax.lax.conv_general_dilated(
            y, w, window_strides=stride, padding=((1, 1), (1, 1)),
            dimension_numbers=("NCHW", "OIHW", "NCHW"),
            precision=jax.lax.Precision.HIGHEST)
        y = jnp.maximum(y + b.reshape(1, -1, 1, 1), 0.0)
    return y


# ----------------------------------------------------------------------------
if __name__ == "__main__":
    key = jax.random.PRNGKey(0)
    key, kx = jax.random.split(key)

    batch, in_ch, out_ch, spatial = 2, 4, 8, 16
    n_layers_in_block = 2

    x = jax.random.normal(kx, (batch, in_ch, spatial, spatial), jnp.float32)
    raw = init_downblock_raw(key, in_ch, out_ch, n_layers_in_block, bias=True)
    params = pack_downblock_params(raw)

    y = downblock_forward(x, params, out_channels=out_ch)
    y = jax.block_until_ready(y)

    # stride-2 first conv halves spatial dims: (2, 8, 8, 8)
    assert y.shape == (batch, out_ch, spatial // 2, spatial // 2), y.shape
    assert bool(jnp.all(y >= 0.0))                  # ReLU output is non-negative

    # numerical sanity check vs plain-JAX conv (bf16 MXU feeds -> loose tolerance)
    y_ref = _reference_forward(x, raw)
    err = float(jnp.max(jnp.abs(y - y_ref)))
    assert err < 5e-2, err

    print("KERNEL_OK")
</pallas_src>

<mosaic_0001>
module attributes {stable_mosaic.version = 11 : i64} {
  func.func @kernel(%arg0: i32, %arg1: i32, %arg2: memref<1x9x9x16xbf16, #tpu.memory_space<vmem>>, %arg3: memref<4x16x128xbf16, #tpu.memory_space<vmem>>, %arg4: memref<1x128xf32, #tpu.memory_space<vmem>>, %arg5: memref<1x8x8x128xbf16, #tpu.memory_space<vmem>>) attributes {dimension_semantics = [#tpu.dimension_semantics<parallel>, #tpu.dimension_semantics<parallel>], iteration_bounds = array<i64: 2, 1>, scalar_prefetch = 0 : i64, scratch_operands = 0 : i64, tpu.core_type = #tpu.core_type<tc>, window_params = [{transform_indices = @transform_0, window_bounds = array<i64: 1, 9, 9, 16>}, {pipeline_mode = #tpu.pipeline_mode<synchronous>, transform_indices = @transform_1, window_bounds = array<i64: 4, 16, 128>}, {pipeline_mode = #tpu.pipeline_mode<synchronous>, transform_indices = @transform_2, window_bounds = array<i64: 1, 128>}, {transform_indices = @transform_3, window_bounds = array<i64: 1, 8, 8, 128>}]} {
    %c8_i32 = arith.constant 8 : i32
    %0 = arith.muli %arg1, %c8_i32 : i32
    %cst = arith.constant 0.000000e+00 : f32
    %1 = vector.broadcast %cst : f32 to vector<64x128xf32>
    %c0_i32 = arith.constant 0 : i32
    %2 = arith.addi %0, %c0_i32 : i32
    %c0 = arith.constant 0 : index
    %3 = arith.index_cast %2 : i32 to index
    %c0_0 = arith.constant 0 : index
    %c0_1 = arith.constant 0 : index
    %4 = vector.load %arg2[%c0, %3, %c0_0, %c0_1] : memref<1x9x9x16xbf16, #tpu.memory_space<vmem>>, vector<1x8x8x16xbf16>
    %5 = vector.shape_cast %4 : vector<1x8x8x16xbf16> to vector<8x8x16xbf16>
    %6 = vector.shape_cast %5 : vector<8x8x16xbf16> to vector<64x16xbf16>
    %c0_2 = arith.constant 0 : index
    %c0_3 = arith.constant 0 : index
    %c0_4 = arith.constant 0 : index
    %7 = vector.load %arg3[%c0_2, %c0_3, %c0_4] : memref<4x16x128xbf16, #tpu.memory_space<vmem>>, vector<1x16x128xbf16>
    %8 = vector.shape_cast %7 : vector<1x16x128xbf16> to vector<16x128xbf16>
    %cst_5 = arith.constant dense<0.000000e+00> : vector<64x128xf32>
    %9 = tpu.matmul %6, %8, %cst_5 {dimension_numbers = #tpu.dot_dimension_numbers<[1], [0], [0], [1], [0, 0, 1, 1], [], []>} : vector<64x16xbf16>, vector<16x128xbf16>, vector<64x128xf32> -> vector<64x128xf32>
    %10 = arith.addf %1, %9 : vector<64x128xf32>
    %c0_i32_6 = arith.constant 0 : i32
    %11 = arith.addi %0, %c0_i32_6 : i32
    %c0_7 = arith.constant 0 : index
    %12 = arith.index_cast %11 : i32 to index
    %c1 = arith.constant 1 : index
    %c0_8 = arith.constant 0 : index
    %13 = vector.load %arg2[%c0_7, %12, %c1, %c0_8] : memref<1x9x9x16xbf16, #tpu.memory_space<vmem>>, vector<1x8x8x16xbf16>
    %14 = vector.shape_cast %13 : vector<1x8x8x16xbf16> to vector<8x8x16xbf16>
    %15 = vector.shape_cast %14 : vector<8x8x16xbf16> to vector<64x16xbf16>
    %c1_9 = arith.constant 1 : index
    %c0_10 = arith.constant 0 : index
    %c0_11 = arith.constant 0 : index
    %16 = vector.load %arg3[%c1_9, %c0_10, %c0_11] : memref<4x16x128xbf16, #tpu.memory_space<vmem>>, vector<1x16x128xbf16>
    %17 = vector.shape_cast %16 : vector<1x16x128xbf16> to vector<16x128xbf16>
    %cst_12 = arith.constant dense<0.000000e+00> : vector<64x128xf32>
    %18 = tpu.matmul %15, %17, %cst_12 {dimension_numbers = #tpu.dot_dimension_numbers<[1], [0], [0], [1], [0, 0, 1, 1], [], []>} : vector<64x16xbf16>, vector<16x128xbf16>, vector<64x128xf32> -> vector<64x128xf32>
    %19 = arith.addf %10, %18 : vector<64x128xf32>
    %c1_i32 = arith.constant 1 : i32
    %20 = arith.addi %0, %c1_i32 : i32
    %c0_13 = arith.constant 0 : index
    %21 = arith.index_cast %20 : i32 to index
    %c0_14 = arith.constant 0 : index
    %c0_15 = arith.constant 0 : index
    %22 = vector.load %arg2[%c0_13, %21, %c0_14, %c0_15] : memref<1x9x9x16xbf16, #tpu.memory_space<vmem>>, vector<1x8x8x16xbf16>
    %23 = vector.shape_cast %22 : vector<1x8x8x16xbf16> to vector<8x8x16xbf16>
    %24 = vector.shape_cast %23 : vector<8x8x16xbf16> to vector<64x16xbf16>
    %c2 = arith.constant 2 : index
    %c0_16 = arith.constant 0 : index
    %c0_17 = arith.constant 0 : index
    %25 = vector.load %arg3[%c2, %c0_16, %c0_17] : memref<4x16x128xbf16, #tpu.memory_space<vmem>>, vector<1x16x128xbf16>
    %26 = vector.shape_cast %25 : vector<1x16x128xbf16> to vector<16x128xbf16>
    %cst_18 = arith.constant dense<0.000000e+00> : vector<64x128xf32>
    %27 = tpu.matmul %24, %26, %cst_18 {dimension_numbers = #tpu.dot_dimension_numbers<[1], [0], [0], [1], [0, 0, 1, 1], [], []>} : vector<64x16xbf16>, vector<16x128xbf16>, vector<64x128xf32> -> vector<64x128xf32>
    %28 = arith.addf %19, %27 : vector<64x128xf32>
    %c1_i32_19 = arith.constant 1 : i32
    %29 = arith.addi %0, %c1_i32_19 : i32
    %c0_20 = arith.constant 0 : index
    %30 = arith.index_cast %29 : i32 to index
    %c1_21 = arith.constant 1 : index
    %c0_22 = arith.constant 0 : index
    %31 = vector.load %arg2[%c0_20, %30, %c1_21, %c0_22] : memref<1x9x9x16xbf16, #tpu.memory_space<vmem>>, vector<1x8x8x16xbf16>
    %32 = vector.shape_cast %31 : vector<1x8x8x16xbf16> to vector<8x8x16xbf16>
    %33 = vector.shape_cast %32 : vector<8x8x16xbf16> to vector<64x16xbf16>
    %c3 = arith.constant 3 : index
    %c0_23 = arith.constant 0 : index
    %c0_24 = arith.constant 0 : index
    %34 = vector.load %arg3[%c3, %c0_23, %c0_24] : memref<4x16x128xbf16, #tpu.memory_space<vmem>>, vector<1x16x128xbf16>
    %35 = vector.shape_cast %34 : vector<1x16x128xbf16> to vector<16x128xbf16>
    %cst_25 = arith.constant dense<0.000000e+00> : vector<64x128xf32>
    %36 = tpu.matmul %33, %35, %cst_25 {dimension_numbers = #tpu.dot_dimension_numbers<[1], [0], [0], [1], [0, 0, 1, 1], [], []>} : vector<64x16xbf16>, vector<16x128xbf16>, vector<64x128xf32> -> vector<64x128xf32>
    %37 = arith.addf %28, %36 : vector<64x128xf32>
    %c0_26 = arith.constant 0 : index
    %c0_27 = arith.constant 0 : index
    %38 = vector.load %arg4[%c0_26, %c0_27] : memref<1x128xf32, #tpu.memory_space<vmem>>, vector<1x128xf32>
    %39 = vector.broadcast %38 : vector<1x128xf32> to vector<64x128xf32>
    %40 = arith.addf %37, %39 : vector<64x128xf32>
    %cst_28 = arith.constant 0.000000e+00 : f32
    %41 = vector.broadcast %cst_28 : f32 to vector<64x128xf32>
    %42 = arith.maximumf %40, %41 : vector<64x128xf32>
    %43 = vector.shape_cast %42 : vector<64x128xf32> to vector<1x8x8x128xf32>
    %44 = arith.truncf %43 : vector<1x8x8x128xf32> to vector<1x8x8x128xbf16>
    %c0_29 = arith.constant 0 : index
    %c0_30 = arith.constant 0 : index
    %c0_31 = arith.constant 0 : index
    %c0_32 = arith.constant 0 : index
    %45 = vector.load %arg5[%c0_29, %c0_30, %c0_31, %c0_32] : memref<1x8x8x128xbf16, #tpu.memory_space<vmem>>, vector<1x8x8x128xbf16>
    tpu.vector_store %arg5[%c0_29, %c0_30, %c0_31, %c0_32], %44 {strides = array<i32>} : memref<1x8x8x128xbf16, #tpu.memory_space<vmem>>, vector<1x8x8x128xbf16>,
    return
  }
  func.func @transform_0(%arg0: i32, %arg1: i32) -> (i32, i32, i32, i32) {
    %c0_i32 = arith.constant 0 : i32
    %c0_i32_0 = arith.constant 0 : i32
    %c0_i32_1 = arith.constant 0 : i32
    %c0_i32_2 = arith.constant 0 : i32
    return %arg0, %c0_i32, %c0_i32_0, %c0_i32_1 : i32, i32, i32, i32
  }
  func.func @transform_1(%arg0: i32, %arg1: i32) -> (i32, i32, i32) {
    %c0_i32 = arith.constant 0 : i32
    %c0_i32_0 = arith.constant 0 : i32
    %c0_i32_1 = arith.constant 0 : i32
    %c0_i32_2 = arith.constant 0 : i32
    return %c0_i32, %c0_i32_0, %c0_i32_1 : i32, i32, i32
  }
  func.func @transform_2(%arg0: i32, %arg1: i32) -> (i32, i32) {
    %c0_i32 = arith.constant 0 : i32
    %c0_i32_0 = arith.constant 0 : i32
    %c0_i32_1 = arith.constant 0 : i32
    return %c0_i32, %c0_i32_0 : i32, i32
  }
  func.func @transform_3(%arg0: i32, %arg1: i32) -> (i32, i32, i32, i32) {
    %c0_i32 = arith.constant 0 : i32
    %c0_i32_0 = arith.constant 0 : i32
    %c0_i32_1 = arith.constant 0 : i32
    return %arg0, %arg1, %c0_i32, %c0_i32_0 : i32, i32, i32, i32
  }
}

module attributes {stable_mosaic.version = 11 : i64} {
  func.func @kernel(%arg0: i32, %arg1: i32, %arg2: memref<1x10x10x8xbf16, #tpu.memory_space<vmem>>, %arg3: memref<9x8x128xbf16, #tpu.memory_space<vmem>>, %arg4: memref<1x128xf32, #tpu.memory_space<vmem>>, %arg5: memref<1x8x8x128xbf16, #tpu.memory_space<vmem>>) attributes {dimension_semantics = [#tpu.dimension_semantics<parallel>, #tpu.dimension_semantics<parallel>], iteration_bounds = array<i64: 2, 1>, scalar_prefetch = 0 : i64, scratch_operands = 0 : i64, tpu.core_type = #tpu.core_type<tc>, window_params = [{transform_indices = @transform_0, window_bounds = array<i64: 1, 10, 10, 8>}, {pipeline_mode = #tpu.pipeline_mode<synchronous>, transform_indices = @transform_1, window_bounds = array<i64: 9, 8, 128>}, {pipeline_mode = #tpu.pipeline_mode<synchronous>, transform_indices = @transform_2, window_bounds = array<i64: 1, 128>}, {transform_indices = @transform_3, window_bounds = array<i64: 1, 8, 8, 128>}]} {
    %c8_i32 = arith.constant 8 : i32
    %0 = arith.muli %arg1, %c8_i32 : i32
    %cst = arith.constant 0.000000e+00 : f32
    %1 = vector.broadcast %cst : f32 to vector<64x128xf32>
    %c0_i32 = arith.constant 0 : i32
    %2 = arith.addi %0, %c0_i32 : i32
    %c0 = arith.constant 0 : index
    %3 = arith.index_cast %2 : i32 to index
    %c0_0 = arith.constant 0 : index
    %c0_1 = arith.constant 0 : index
    %4 = vector.load %arg2[%c0, %3, %c0_0, %c0_1] : memref<1x10x10x8xbf16, #tpu.memory_space<vmem>>, vector<1x8x8x8xbf16>
    %5 = vector.shape_cast %4 : vector<1x8x8x8xbf16> to vector<8x8x8xbf16>
    %6 = vector.shape_cast %5 : vector<8x8x8xbf16> to vector<64x8xbf16>
    %c0_2 = arith.constant 0 : index
    %c0_3 = arith.constant 0 : index
    %c0_4 = arith.constant 0 : index
    %7 = vector.load %arg3[%c0_2, %c0_3, %c0_4] : memref<9x8x128xbf16, #tpu.memory_space<vmem>>, vector<1x8x128xbf16>
    %8 = vector.shape_cast %7 : vector<1x8x128xbf16> to vector<8x128xbf16>
    %cst_5 = arith.constant dense<0.000000e+00> : vector<64x128xf32>
    %9 = tpu.matmul %6, %8, %cst_5 {dimension_numbers = #tpu.dot_dimension_numbers<[1], [0], [0], [1], [0, 0, 1, 1], [], []>} : vector<64x8xbf16>, vector<8x128xbf16>, vector<64x128xf32> -> vector<64x128xf32>
    %10 = arith.addf %1, %9 : vector<64x128xf32>
    %c0_i32_6 = arith.constant 0 : i32
    %11 = arith.addi %0, %c0_i32_6 : i32
    %c0_7 = arith.constant 0 : index
    %12 = arith.index_cast %11 : i32 to index
    %c1 = arith.constant 1 : index
    %c0_8 = arith.constant 0 : index
    %13 = vector.load %arg2[%c0_7, %12, %c1, %c0_8] : memref<1x10x10x8xbf16, #tpu.memory_space<vmem>>, vector<1x8x8x8xbf16>
    %14 = vector.shape_cast %13 : vector<1x8x8x8xbf16> to vector<8x8x8xbf16>
    %15 = vector.shape_cast %14 : vector<8x8x8xbf16> to vector<64x8xbf16>
    %c1_9 = arith.constant 1 : index
    %c0_10 = arith.constant 0 : index
    %c0_11 = arith.constant 0 : index
    %16 = vector.load %arg3[%c1_9, %c0_10, %c0_11] : memref<9x8x128xbf16, #tpu.memory_space<vmem>>, vector<1x8x128xbf16>
    %17 = vector.shape_cast %16 : vector<1x8x128xbf16> to vector<8x128xbf16>
    %cst_12 = arith.constant dense<0.000000e+00> : vector<64x128xf32>
    %18 = tpu.matmul %15, %17, %cst_12 {dimension_numbers = #tpu.dot_dimension_numbers<[1], [0], [0], [1], [0, 0, 1, 1], [], []>} : vector<64x8xbf16>, vector<8x128xbf16>, vector<64x128xf32> -> vector<64x128xf32>
    %19 = arith.addf %10, %18 : vector<64x128xf32>
    %c0_i32_13 = arith.constant 0 : i32
    %20 = arith.addi %0, %c0_i32_13 : i32
    %c0_14 = arith.constant 0 : index
    %21 = arith.index_cast %20 : i32 to index
    %c2 = arith.constant 2 : index
    %c0_15 = arith.constant 0 : index
    %22 = vector.load %arg2[%c0_14, %21, %c2, %c0_15] : memref<1x10x10x8xbf16, #tpu.memory_space<vmem>>, vector<1x8x8x8xbf16>
    %23 = vector.shape_cast %22 : vector<1x8x8x8xbf16> to vector<8x8x8xbf16>
    %24 = vector.shape_cast %23 : vector<8x8x8xbf16> to vector<64x8xbf16>
    %c2_16 = arith.constant 2 : index
    %c0_17 = arith.constant 0 : index
    %c0_18 = arith.constant 0 : index
    %25 = vector.load %arg3[%c2_16, %c0_17, %c0_18] : memref<9x8x128xbf16, #tpu.memory_space<vmem>>, vector<1x8x128xbf16>
    %26 = vector.shape_cast %25 : vector<1x8x128xbf16> to vector<8x128xbf16>
    %cst_19 = arith.constant dense<0.000000e+00> : vector<64x128xf32>
    %27 = tpu.matmul %24, %26, %cst_19 {dimension_numbers = #tpu.dot_dimension_numbers<[1], [0], [0], [1], [0, 0, 1, 1], [], []>} : vector<64x8xbf16>, vector<8x128xbf16>, vector<64x128xf32> -> vector<64x128xf32>
    %28 = arith.addf %19, %27 : vector<64x128xf32>
    %c1_i32 = arith.constant 1 : i32
    %29 = arith.addi %0, %c1_i32 : i32
    %c0_20 = arith.constant 0 : index
    %30 = arith.index_cast %29 : i32 to index
    %c0_21 = arith.constant 0 : index
    %c0_22 = arith.constant 0 : index
    %31 = vector.load %arg2[%c0_20, %30, %c0_21, %c0_22] : memref<1x10x10x8xbf16, #tpu.memory_space<vmem>>, vector<1x8x8x8xbf16>
    %32 = vector.shape_cast %31 : vector<1x8x8x8xbf16> to vector<8x8x8xbf16>
    %33 = vector.shape_cast %32 : vector<8x8x8xbf16> to vector<64x8xbf16>
    %c3 = arith.constant 3 : index
    %c0_23 = arith.constant 0 : index
    %c0_24 = arith.constant 0 : index
    %34 = vector.load %arg3[%c3, %c0_23, %c0_24] : memref<9x8x128xbf16, #tpu.memory_space<vmem>>, vector<1x8x128xbf16>
    %35 = vector.shape_cast %34 : vector<1x8x128xbf16> to vector<8x128xbf16>
    %cst_25 = arith.constant dense<0.000000e+00> : vector<64x128xf32>
    %36 = tpu.matmul %33, %35, %cst_25 {dimension_numbers = #tpu.dot_dimension_numbers<[1], [0], [0], [1], [0, 0, 1, 1], [], []>} : vector<64x8xbf16>, vector<8x128xbf16>, vector<64x128xf32> -> vector<64x128xf32>
    %37 = arith.addf %28, %36 : vector<64x128xf32>
    %c1_i32_26 = arith.constant 1 : i32
    %38 = arith.addi %0, %c1_i32_26 : i32
    %c0_27 = arith.constant 0 : index
    %39 = arith.index_cast %38 : i32 to index
    %c1_28 = arith.constant 1 : index
    %c0_29 = arith.constant 0 : index
    %40 = vector.load %arg2[%c0_27, %39, %c1_28, %c0_29] : memref<1x10x10x8xbf16, #tpu.memory_space<vmem>>, vector<1x8x8x8xbf16>
    %41 = vector.shape_cast %40 : vector<1x8x8x8xbf16> to vector<8x8x8xbf16>
    %42 = vector.shape_cast %41 : vector<8x8x8xbf16> to vector<64x8xbf16>
    %c4 = arith.constant 4 : index
    %c0_30 = arith.constant 0 : index
    %c0_31 = arith.constant 0 : index
    %43 = vector.load %arg3[%c4, %c0_30, %c0_31] : memref<9x8x128xbf16, #tpu.memory_space<vmem>>, vector<1x8x128xbf16>
    %44 = vector.shape_cast %43 : vector<1x8x128xbf16> to vector<8x128xbf16>
    %cst_32 = arith.constant dense<0.000000e+00> : vector<64x128xf32>
    %45 = tpu.matmul %42, %44, %cst_32 {dimension_numbers = #tpu.dot_dimension_numbers<[1], [0], [0], [1], [0, 0, 1, 1], [], []>} : vector<64x8xbf16>, vector<8x128xbf16>, vector<64x128xf32> -> vector<64x128xf32>
    %46 = arith.addf %37, %45 : vector<64x128xf32>
    %c1_i32_33 = arith.constant 1 : i32
    %47 = arith.addi %0, %c1_i32_33 : i32
    %c0_34 = arith.constant 0 : index
    %48 = arith.index_cast %47 : i32 to index
    %c2_35 = arith.constant 2 : index
    %c0_36 = arith.constant 0 : index
    %49 = vector.load %arg2[%c0_34, %48, %c2_35, %c0_36] : memref<1x10x10x8xbf16, #tpu.memory_space<vmem>>, vector<1x8x8x8xbf16>
    %50 = vector.shape_cast %49 : vector<1x8x8x8xbf16> to vector<8x8x8xbf16>
    %51 = vector.shape_cast %50 : vector<8x8x8xbf16> to vector<64x8xbf16>
    %c5 = arith.constant 5 : index
    %c0_37 = arith.constant 0 : index
    %c0_38 = arith.constant 0 : index
    %52 = vector.load %arg3[%c5, %c0_37, %c0_38] : memref<9x8x128xbf16, #tpu.memory_space<vmem>>, vector<1x8x128xbf16>
    %53 = vector.shape_cast %52 : vector<1x8x128xbf16> to vector<8x128xbf16>
    %cst_39 = arith.constant dense<0.000000e+00> : vector<64x128xf32>
    %54 = tpu.matmul %51, %53, %cst_39 {dimension_numbers = #tpu.dot_dimension_numbers<[1], [0], [0], [1], [0, 0, 1, 1], [], []>} : vector<64x8xbf16>, vector<8x128xbf16>, vector<64x128xf32> -> vector<64x128xf32>
    %55 = arith.addf %46, %54 : vector<64x128xf32>
    %c2_i32 = arith.constant 2 : i32
    %56 = arith.addi %0, %c2_i32 : i32
    %c0_40 = arith.constant 0 : index
    %57 = arith.index_cast %56 : i32 to index
    %c0_41 = arith.constant 0 : index
    %c0_42 = arith.constant 0 : index
    %58 = vector.load %arg2[%c0_40, %57, %c0_41, %c0_42] : memref<1x10x10x8xbf16, #tpu.memory_space<vmem>>, vector<1x8x8x8xbf16>
    %59 = vector.shape_cast %58 : vector<1x8x8x8xbf16> to vector<8x8x8xbf16>
    %60 = vector.shape_cast %59 : vector<8x8x8xbf16> to vector<64x8xbf16>
    %c6 = arith.constant 6 : index
    %c0_43 = arith.constant 0 : index
    %c0_44 = arith.constant 0 : index
    %61 = vector.load %arg3[%c6, %c0_43, %c0_44] : memref<9x8x128xbf16, #tpu.memory_space<vmem>>, vector<1x8x128xbf16>
    %62 = vector.shape_cast %61 : vector<1x8x128xbf16> to vector<8x128xbf16>
    %cst_45 = arith.constant dense<0.000000e+00> : vector<64x128xf32>
    %63 = tpu.matmul %60, %62, %cst_45 {dimension_numbers = #tpu.dot_dimension_numbers<[1], [0], [0], [1], [0, 0, 1, 1], [], []>} : vector<64x8xbf16>, vector<8x128xbf16>, vector<64x128xf32> -> vector<64x128xf32>
    %64 = arith.addf %55, %63 : vector<64x128xf32>
    %c2_i32_46 = arith.constant 2 : i32
    %65 = arith.addi %0, %c2_i32_46 : i32
    %c0_47 = arith.constant 0 : index
    %66 = arith.index_cast %65 : i32 to index
    %c1_48 = arith.constant 1 : index
    %c0_49 = arith.constant 0 : index
    %67 = vector.load %arg2[%c0_47, %66, %c1_48, %c0_49] : memref<1x10x10x8xbf16, #tpu.memory_space<vmem>>, vector<1x8x8x8xbf16>
    %68 = vector.shape_cast %67 : vector<1x8x8x8xbf16> to vector<8x8x8xbf16>
    %69 = vector.shape_cast %68 : vector<8x8x8xbf16> to vector<64x8xbf16>
    %c7 = arith.constant 7 : index
    %c0_50 = arith.constant 0 : index
    %c0_51 = arith.constant 0 : index
    %70 = vector.load %arg3[%c7, %c0_50, %c0_51] : memref<9x8x128xbf16, #tpu.memory_space<vmem>>, vector<1x8x128xbf16>
    %71 = vector.shape_cast %70 : vector<1x8x128xbf16> to vector<8x128xbf16>
    %cst_52 = arith.constant dense<0.000000e+00> : vector<64x128xf32>
    %72 = tpu.matmul %69, %71, %cst_52 {dimension_numbers = #tpu.dot_dimension_numbers<[1], [0], [0], [1], [0, 0, 1, 1], [], []>} : vector<64x8xbf16>, vector<8x128xbf16>, vector<64x128xf32> -> vector<64x128xf32>
    %73 = arith.addf %64, %72 : vector<64x128xf32>
    %c2_i32_53 = arith.constant 2 : i32
    %74 = arith.addi %0, %c2_i32_53 : i32
    %c0_54 = arith.constant 0 : index
    %75 = arith.index_cast %74 : i32 to index
    %c2_55 = arith.constant 2 : index
    %c0_56 = arith.constant 0 : index
    %76 = vector.load %arg2[%c0_54, %75, %c2_55, %c0_56] : memref<1x10x10x8xbf16, #tpu.memory_space<vmem>>, vector<1x8x8x8xbf16>
    %77 = vector.shape_cast %76 : vector<1x8x8x8xbf16> to vector<8x8x8xbf16>
    %78 = vector.shape_cast %77 : vector<8x8x8xbf16> to vector<64x8xbf16>
    %c8 = arith.constant 8 : index
    %c0_57 = arith.constant 0 : index
    %c0_58 = arith.constant 0 : index
    %79 = vector.load %arg3[%c8, %c0_57, %c0_58] : memref<9x8x128xbf16, #tpu.memory_space<vmem>>, vector<1x8x128xbf16>
    %80 = vector.shape_cast %79 : vector<1x8x128xbf16> to vector<8x128xbf16>
    %cst_59 = arith.constant dense<0.000000e+00> : vector<64x128xf32>
    %81 = tpu.matmul %78, %80, %cst_59 {dimension_numbers = #tpu.dot_dimension_numbers<[1], [0], [0], [1], [0, 0, 1, 1], [], []>} : vector<64x8xbf16>, vector<8x128xbf16>, vector<64x128xf32> -> vector<64x128xf32>
    %82 = arith.addf %73, %81 : vector<64x128xf32>
    %c0_60 = arith.constant 0 : index
    %c0_61 = arith.constant 0 : index
    %83 = vector.load %arg4[%c0_60, %c0_61] : memref<1x128xf32, #tpu.memory_space<vmem>>, vector<1x128xf32>
    %84 = vector.broadcast %83 : vector<1x128xf32> to vector<64x128xf32>
    %85 = arith.addf %82, %84 : vector<64x128xf32>
    %cst_62 = arith.constant 0.000000e+00 : f32
    %86 = vector.broadcast %cst_62 : f32 to vector<64x128xf32>
    %87 = arith.maximumf %85, %86 : vector<64x128xf32>
    %88 = vector.shape_cast %87 : vector<64x128xf32> to vector<1x8x8x128xf32>
    %89 = arith.truncf %88 : vector<1x8x8x128xf32> to vector<1x8x8x128xbf16>
    %c0_63 = arith.constant 0 : index
    %c0_64 = arith.constant 0 : index
    %c0_65 = arith.constant 0 : index
    %c0_66 = arith.constant 0 : index
    %90 = vector.load %arg5[%c0_63, %c0_64, %c0_65, %c0_66] : memref<1x8x8x128xbf16, #tpu.memory_space<vmem>>, vector<1x8x8x128xbf16>
    tpu.vector_store %arg5[%c0_63, %c0_64, %c0_65, %c0_66], %89 {strides = array<i32>} : memref<1x8x8x128xbf16, #tpu.memory_space<vmem>>, vector<1x8x8x128xbf16>,
    return
  }
  func.func @transform_0(%arg0: i32, %arg1: i32) -> (i32, i32, i32, i32) {
    %c0_i32 = arith.constant 0 : i32
    %c0_i32_0 = arith.constant 0 : i32
    %c0_i32_1 = arith.constant 0 : i32
    %c0_i32_2 = arith.constant 0 : i32
    return %arg0, %c0_i32, %c0_i32_0, %c0_i32_1 : i32, i32, i32, i32
  }
  func.func @transform_1(%arg0: i32, %arg1: i32) -> (i32, i32, i32) {
    %c0_i32 = arith.constant 0 : i32
    %c0_i32_0 = arith.constant 0 : i32
    %c0_i32_1 = arith.constant 0 : i32
    %c0_i32_2 = arith.constant 0 : i32
    return %c0_i32, %c0_i32_0, %c0_i32_1 : i32, i32, i32
  }
  func.func @transform_2(%arg0: i32, %arg1: i32) -> (i32, i32) {
    %c0_i32 = arith.constant 0 : i32
    %c0_i32_0 = arith.constant 0 : i32
    %c0_i32_1 = arith.constant 0 : i32
    return %c0_i32, %c0_i32_0 : i32, i32
  }
  func.func @transform_3(%arg0: i32, %arg1: i32) -> (i32, i32, i32, i32) {
    %c0_i32 = arith.constant 0 : i32
    %c0_i32_0 = arith.constant 0 : i32
    %c0_i32_1 = arith.constant 0 : i32
    return %arg0, %arg1, %c0_i32, %c0_i32_0 : i32, i32, i32, i32
  }
}

</mosaic_0001>

<bundles_post_ra>
// kernel: downblock_forward.2
= control target key start
LH: loop header
LB: loop body
LE: loop exit
PB: predicated region body
PF: predicated region fallthrough
CT: control target
= control target key end

     0   :  { %s1286_s12 = smov 0   ;;  %s1288_s13 = smov 0   ;;  %s1474_s0 = inlined_call_operand.vmem [shape: bf16[2,9,9,16], index: 0, kind: input, shape index: {}]   ;;  %s1475_s1 = inlined_call_operand.vmem [shape: bf16[4,16,128], index: 1, kind: input, shape index: {}]   ;;  %s1476_s2 = inlined_call_operand.vmem [shape: f32[1,128], index: 2, kind: input, shape index: {}]   ;;  %s1477_s3 = inlined_call_operand.vmem [shape: bf16[2,8,8,128], index: 3, kind: output, shape index: {}]  }
   0x1   :  { %s1290_s14 = smov 0  }
   0x2 LB: > { %s25_s15 = sadd.s32 1, %s1260_s13  ;;  %p1024_p0 = scmp.ge.s32.totalorder %s1264_s14, 1  ;;  %s1264_s14 = sphi %s1290_s14, %s13_s14   ;;  %s1260_s13 = sphi %s1288_s13, %s1481_s13   ;;  %s1256_s12 = sphi %s1286_s12, %s1480_s12  }
   0x3   : > { %p27_p1 = scmp.ge.s32.totalorder %s25_s15, 2  ;;  %p151_p2 = scmp.lt.s32.totalorder %s1264_s14, 3 }
   0x5   : > { %s1483_s15 = smov (%p27_p1, %s25_s15), 0  ;;  %p152_p3 = pnand %p1024_p0, %p151_p2 }
   0x6   : > { %v1230_v0 = vld [vmem:[%s1475_s1 + $0x10] sm:$0xff] (!%p152_p3)   ;;  %p179_p4 = scmp.lt.s32.totalorder (!%p152_p3), %s1256_s12, 1  ;;  %v1233_v1 = vld [vmem:[%s1475_s1 + $0x8] sm:$0xff] (!%p152_p3)   ;;  %v1315_v2 = vld [vmem:[%s1475_s1] sm:$0xff] (!%p152_p3)   ;;  %vm353_vm0 = vcmask (!%p152_p3), 130048  }
   0x7   : > { %155 = sbr.rel (%p152_p3) target bundleno = 297 (0x129), region = 32  ;;  %1161 = vmatprep.subr.bf16.mxu0 (!%p152_p3), %v1230_v0  ;;  %1141 = vmatprep.subr.bf16.mxu1 (!%p152_p3), %v1233_v1  ;;  %v1237_v3 = vld [vmem:[%s1475_s1 + $0x18] sm:$0xff] (!%p152_p3)   ;;  %vm217_vm1 = vsmask.f32 (!%p152_p3), 3328  ;;  %vm218_vm2 = vsmask.f32 (!%p152_p3), 7440 }
   0x8   : > { %1162 = vmatpush3.bf16.msra.mxu0 (!%p152_p3), %v1230_v0  ;;  %1142 = vmatpush3.bf16.msra.mxu1 (!%p152_p3), %v1233_v1  ;;  %vm1358_vm3 = vmor (!%p152_p3), %vm217_vm1, %vm218_vm2  ;;  %v1094_v31 = vld [vmem:[%s1476_s2] ss:$0 sm:$0xff] (!%p152_p3) }
   0x9   : > { %1151 = vmatprep.subr.bf16.mxu1 (!%p152_p3), %v1315_v2  ;;  %1171 = vmatprep.subr.bf16.mxu0 (!%p152_p3), %v1237_v3 }
   0xe   : > { %s1485_s12 = smov (!%p179_p4, %s1256_s12), 1 }
   0xf   : > { %s1205_s22 = smul.u32 72, %s1485_s12  ;;  %s1097_s30 = sshll.u32 %s1485_s12, 5 }
  0x10   : > { %s192_s6 = scalar_lea.vmem %s1477_s3, %s1097_s30 }
  0x11   : > { %s1325_s27 = scalar_lea.vmem %s1474_s0, %s1205_s22 }
  0x12   : > { %v1231_v4 = vld [vmem:[%s1325_s27 + $0x8] ss:$8 sps:$4 sm:$0xff]   ;;  %v1232_v5 = vld [vmem:[%s1325_s27 + $0x18] ss:$8 sps:$4 sm:$0xff]   ;;  %v209_v9 = vld [vmem:[%s1325_s27 + $0x4] sm:$0x1] }
  0x13   : > { %1163 = vmatprep.mubr.msk.bf16.mxu0 %vm353_vm0, %v1231_v4  ;;  %v1234_v6 = vld [vmem:[%s1325_s27 + $0x28] ss:$8 sps:$4 sm:$0xff]   ;;  %v1333_v7 = vld [vmem:[%s1325_s27] sm:$0xf]  ;;  %v210_v10 = vld [vmem:[%s1325_s27 + $0xc] sm:$0x1] }
  0x14   : > { %1164 = vmatmul.mubr.msk.bf16.vlgmr.msra.gmra.mrb[0].mxu0 %vm353_vm0, %v1232_v5  ;;  %v1336_v8 = vld [vmem:[%s1325_s27 + $0x8] sm:$0xf]  ;;  %v221_v11 = vshrl.u32 %v1333_v7, 16  ;;  %v224_v12 = vshll.u32 %v1333_v7, 16  ;;  %v230_v13 = vshll.u32 %v209_v9, 16  ;;  %v244_v16 = vshll.u32 %v210_v10, 16 }
  0x15   : > { %1167 = vmatprep.mubr.msk.bf16.mxu0 %vm353_vm0, %v1234_v6  ;;  %v235_v14 = vshrl.u32 %v1336_v8, 16  ;;  %1172 = vmatpush3.bf16.msra.mxu0 %v1237_v3  ;;  %v238_v15 = vshll.u32 %v1336_v8, 16  ;;  %v1236_v21 = vld [vmem:[%s1325_s27 + $0x38] ss:$8 sps:$4 sm:$0xff]   ;;  %v1347_v24 = vld [vmem:[%s1325_s27 + $0x10] sm:$0xf] }
  0x16   : > { %v223_v17 = vrot.slane %v221_v11, 4  ;;  %v226_v18 = vrot.slane %v224_v12, 5  ;;  %v232_v19 = vrot.slane %v230_v13, 5  ;;  %v246_v23 = vrot.slane %v244_v16, 5  ;;  %v1350_v25 = vld [vmem:[%s1325_s27 + $0x18] sm:$0xf] }
  0x17   : > { %v237_v20 = vrot.slane %v235_v14, 4  ;;  %v240_v22 = vrot.slane %v238_v15, 5  ;;  %v211_v27 = vld [vmem:[%s1325_s27 + $0x14] sm:$0x1]  ;;  %v212_v28 = vld [vmem:[%s1325_s27 + $0x1c] sm:$0x1] }
  0x18   : > { %v227_v26 = vor.u32 %v226_v18, %v223_v17  ;;  %v249_v29 = vshrl.u32 %v1347_v24, 16  ;;  %v252_v30 = vshll.u32 %v1347_v24, 16  ;;  %v258_v33 = vshll.u32 %v211_v27, 16  ;;  %v1067_v36 = vld [vmem:[%s1325_s27 + $0x8] sm:$0xf] }
  0x19   : > { %v241_v32 = vor.u32 %v240_v22, %v237_v20  ;;  %v263_v34 = vshrl.u32 %v1350_v25, 16  ;;  %v266_v35 = vshll.u32 %v1350_v25, 16  ;;  %v272_v40 = vshll.u32 %v212_v28, 16  ;;  %v1068_v41 = vld [vmem:[%s1325_s27 + $0xc] sm:$0x1] }
  0x1a   : > { %v228_v37 = vrot.slane %v227_v26, 4  ;;  %v251_v38 = vrot.slane %v249_v29, 4  ;;  %v254_v39 = vrot.slane %v252_v30, 5  ;;  %v260_v43 = vrot.slane %v258_v33, 5  ;;  %v1069_v46 = vld [vmem:[%s1325_s27 + $0x10] sm:$0xf] }
  0x1b   : > { %v242_v42 = vrot.slane %v241_v32, 4  ;;  %v265_v44 = vrot.slane %v263_v34, 4  ;;  %v268_v45 = vrot.slane %v266_v35, 5  ;;  %v274_v49 = vrot.slane %v272_v40, 5  ;;  %v1070_v53 = vld [vmem:[%s1325_s27 + $0x14] sm:$0x1] }
  0x1c   : > { %1168 = vmatmul.mubr.msk.bf16.gmra.mrb[4].mxu0 %vm353_vm0, %v1236_v21  ;;  %v233_v47 = vsel %vm1358_vm3, %v228_v37, %v232_v19  ;;  %v255_v48 = vor.u32 %v254_v39, %v251_v38  ;;  %v677_v50 = vshrl.u32 %v1067_v36, 16  ;;  %v680_v54 = vshll.u32 %v1067_v36, 16  ;;  %v1374_v56 = vld [vmem:[%s1325_s27 + $0x20] sm:$0xf]  ;;  %v213_v1 = vld [vmem:[%s1325_s27 + $0x24] sm:$0x1] }
  0x1d   : > { %v247_v51 = vsel %vm1358_vm3, %v242_v42, %v246_v23  ;;  %v269_v52 = vor.u32 %v268_v45, %v265_v44  ;;  %v686_v55 = vshll.u32 %v1068_v41, 16  ;;  %v691_v60 = vshrl.u32 %v1069_v46, 16  ;;  %v1381_v6 = vld [vmem:[%s1325_s27 + $0x28] sm:$0xf]  ;;  %v214_v13 = vld [vmem:[%s1325_s27 + $0x2c] sm:$0x1] }
  0x1e   : > { %v1030_v57 = vcombine.low %v233_v47, %v247_v51  ;;  %v256_v58 = vrot.slane %v255_v48, 4  ;;  %v679_v59 = vrot.slane %v677_v50, 4  ;;  %v682_v62 = vrot.slane %v680_v54, 5  ;;  %v1071_v15 = vld [vmem:[%s1325_s27 + $0x18] sm:$0xf] }
  0x1f   : > { %v270_v61 = vrot.slane %v269_v52, 4  ;;  %v688_v63 = vrot.slane %v686_v55, 5  ;;  %v694_v0 = vshll.u32 %v1069_v46, 16  ;;  %v693_v4 = vrot.slane %v691_v60, 4  ;;  %v1072_v26 = vld [vmem:[%s1325_s27 + $0x1c] sm:$0x1] }
  0x20   : > { %1143 = vmatprep.mubr.msk.bf16.mxu1 %vm353_vm0, %v1030_v57  ;;  %v261_v3 = vsel %vm1358_vm3, %v256_v58, %v260_v43  ;;  %v700_v5 = vshll.u32 %v1070_v53, 16  ;;  %v277_v9 = vshrl.u32 %v1374_v56, 16  ;;  %v683_v11 = vor.u32 %v682_v62, %v679_v59  ;;  %v1073_v30 = vld [vmem:[%s1325_s27 + $0x20] sm:$0xf]  ;;  %v1074_v39 = vld [vmem:[%s1325_s27 + $0x24] sm:$0x1] }
  0x21   : > { %v275_v10 = vsel %vm1358_vm3, %v270_v61, %v274_v49  ;;  %v696_v12 = vrot.slane %v694_v0, 5  ;;  %v280_v14 = vshll.u32 %v1374_v56, 16  ;;  %v286_v19 = vshll.u32 %v213_v1, 16  ;;  %v1404_v50 = vld [vmem:[%s1325_s27 + $0x38] sm:$0xf] }
  0x22   : > { %v1031_v16 = vcombine.low %v261_v3, %v275_v10  ;;  %v702_v17 = vrot.slane %v700_v5, 5  ;;  %v279_v18 = vrot.slane %v277_v9, 4  ;;  %v684_v20 = vrot.slane %v683_v11, 4  ;;  %v215_v51 = vld [vmem:[%s1325_s27 + $0x34] sm:$0x1] }
  0x23   : > { %v697_v21 = vor.u32 %v696_v12, %v693_v4  ;;  %v282_v22 = vrot.slane %v280_v14, 5  ;;  %v291_v23 = vshrl.u32 %v1381_v6, 16  ;;  %v288_v27 = vrot.slane %v286_v19, 5  ;;  %v216_v62 = vld [vmem:[%s1325_s27 + $0x3c] sm:$0x1] }
  0x24   : > { %1144 = vmatmul.mubr.msk.bf16.vlgmr.msra.gmra.mrb[0].mxu1 %vm353_vm0, %v1031_v16  ;;  %v294_v28 = vshll.u32 %v1381_v6, 16  ;;  %v300_v29 = vshll.u32 %v214_v13, 16  ;;  %v705_v32 = vshrl.u32 %v1071_v15, 16  ;;  %v689_v33 = vsel %vm1358_vm3, %v684_v20, %v688_v63  ;;  %v1075_v10 = vld [vmem:[%s1325_s27 + $0x28] sm:$0xf] }
  0x25   : > { %1152 = vmatpush3.bf16.msra.mxu1 %v1315_v2  ;;  %v698_v34 = vrot.slane %v697_v21, 4  ;;  %v283_v35 = vor.u32 %v282_v22, %v279_v18  ;;  %v293_v36 = vrot.slane %v291_v23, 4  ;;  %v708_v41 = vshll.u32 %v1071_v15, 16  ;;  %v1401_v2 = vld [vmem:[%s1325_s27 + $0x30] sm:$0xf] }
  0x26   : > { %v296_v37 = vrot.slane %v294_v28, 5  ;;  %v302_v38 = vrot.slane %v300_v29, 5  ;;  %v707_v40 = vrot.slane %v705_v32, 4  ;;  %v714_v44 = vshll.u32 %v1072_v26, 16  ;;  %v1076_v11 = vld [vmem:[%s1325_s27 + $0x2c] sm:$0x1] }
  0x27   : > { %v703_v42 = vsel %vm1358_vm3, %v698_v34, %v702_v17  ;;  %v284_v43 = vrot.slane %v283_v35, 4  ;;  %v719_v45 = vshrl.u32 %v1073_v30, 16  ;;  %v710_v48 = vrot.slane %v708_v41, 5  ;;  %v1077_v15 = vld [vmem:[%s1325_s27 + $0x30] sm:$0xf] }
  0x28   : > { %v1085_v46 = vcombine.low %v689_v33, %v703_v42  ;;  %v297_v47 = vor.u32 %v296_v37, %v293_v36  ;;  %v722_v49 = vshll.u32 %v1073_v30, 16  ;;  %v716_v53 = vrot.slane %v714_v44, 5  ;;  %v1078_v22 = vld [vmem:[%s1325_s27 + $0x34] sm:$0x1]  ;;  %v1079_v30 = vld [vmem:[%s1325_s27 + $0x38] sm:$0xf] }
  0x29   : > { %v289_v52 = vsel %vm1358_vm3, %v284_v43, %v288_v27  ;;  %v721_v54 = vrot.slane %v719_v45, 4  ;;  %v728_v55 = vshll.u32 %v1074_v39, 16  ;;  %v711_v58 = vor.u32 %v710_v48, %v707_v40  ;;  %v1080_v36 = vld [vmem:[%s1325_s27 + $0x3c] sm:$0x1]  ;;  %v1081_v41 = vld [vmem:[%s1325_s27 + $0x40] sm:$0xf] }
  0x2a   : > { %1173 = vmatprep.mubr.msk.bf16.mxu0 %vm353_vm0, %v1085_v46  ;;  %v298_v57 = vrot.slane %v297_v47, 4  ;;  %v724_v59 = vrot.slane %v722_v49, 5  ;;  %v305_v60 = vshrl.u32 %v1401_v2, 16  ;;  %v308_v63 = vshll.u32 %v1401_v2, 16 }
  0x2b   : > { %v730_v61 = vrot.slane %v728_v55, 5  ;;  %v314_v0 = vshll.u32 %v215_v51, 16  ;;  %v319_v1 = vshrl.u32 %v1404_v50, 16  ;;  %v712_v4 = vrot.slane %v711_v58, 4 }
  0x2c   : > { %v303_v3 = vsel %vm1358_vm3, %v298_v57, %v302_v38  ;;  %v725_v5 = vor.u32 %v724_v59, %v721_v54  ;;  %v307_v9 = vrot.slane %v305_v60, 4  ;;  %v310_v13 = vrot.slane %v308_v63, 5 }
  0x2d   : > { %v1032_v12 = vcombine.low %v289_v52, %v303_v3  ;;  %v321_v14 = vrot.slane %v319_v1, 4  ;;  %v1039_v16 = vcombine.low %v1333_v7, %v1336_v8  ;;  %v717_v17 = vsel %vm1358_vm3, %v712_v4, %v716_v53  ;;  %v1082_v52 = vld [vmem:[%s1325_s27 + $0x44] sm:$0x1] }
  0x2e   : > { %v726_v18 = vrot.slane %v725_v5, 4  ;;  %v322_v19 = vshll.u32 %v1404_v50, 16  ;;  %v328_v20 = vshll.u32 %v216_v62, 16  ;;  %v311_v21 = vor.u32 %v310_v13, %v307_v9 }
  0x2f   : > { %1147 = vmatprep.mubr.msk.bf16.mxu1 %vm353_vm0, %v1032_v12  ;;  %v733_v23 = vshrl.u32 %v1075_v10, 16  ;;  %v736_v26 = vshll.u32 %v1075_v10, 16  ;;  %v742_v27 = vshll.u32 %v1076_v11, 16  ;;  %v316_v7 = vrot.slane %v314_v0, 5 }
  0x30   : > { %v731_v28 = vsel %vm1358_vm3, %v726_v18, %v730_v61  ;;  %v324_v8 = vrot.slane %v322_v19, 5  ;;  %v747_v29 = vshrl.u32 %v1077_v15, 16  ;;  %v312_v33 = vrot.slane %v311_v21, 4 }
  0x31   : > { %v1086_v32 = vcombine.low %v717_v17, %v731_v28  ;;  %v735_v34 = vrot.slane %v733_v23, 4  ;;  %v738_v35 = vrot.slane %v736_v26, 5  ;;  %v330_v38 = vrot.slane %v328_v20, 5 }
  0x32   : > { %v325_v37 = vor.u32 %v324_v8, %v321_v14  ;;  %v749_v39 = vrot.slane %v747_v29, 4  ;;  %v750_v40 = vshll.u32 %v1077_v15, 16  ;;  %v744_v43 = vrot.slane %v742_v27, 5 }
  0x33   : > { %1174 = vmatmul.mubr.msk.bf16.vlgmr.msra.gmra.mrb[0].mxu0 %vm353_vm0, %v1086_v32  ;;  %v739_v42 = vor.u32 %v738_v35, %v735_v34  ;;  %v756_v44 = vshll.u32 %v1078_v22, 16  ;;  %v761_v45 = vshrl.u32 %v1079_v30, 16  ;;  %v317_v46 = vsel %vm1358_vm3, %v312_v33, %v316_v7 }
  0x34   : > { %v326_v47 = vrot.slane %v325_v37, 4  ;;  %v752_v48 = vrot.slane %v750_v40, 5  ;;  %v764_v49 = vshll.u32 %v1079_v30, 16  ;;  %v770_v54 = vshll.u32 %v1080_v36, 16 }
  0x35   : > { %v740_v51 = vrot.slane %v739_v42, 4  ;;  %v763_v53 = vrot.slane %v761_v45, 4  ;;  %v775_v55 = vshrl.u32 %v1081_v41, 16  ;;  %v758_v59 = vrot.slane %v756_v44, 5 }
  0x36   : > { %v331_v57 = vsel %vm1358_vm3, %v326_v47, %v330_v38  ;;  %v753_v58 = vor.u32 %v752_v48, %v749_v39  ;;  %v766_v60 = vrot.slane %v764_v49, 5  ;;  %v778_v63 = vshll.u32 %v1081_v41, 16 }
  0x37   : > { %v1033_v61 = vcombine.low %v317_v46, %v331_v57  ;;  %v777_v62 = vrot.slane %v775_v55, 4  ;;  %v745_v0 = vsel %vm1358_vm3, %v740_v51, %v744_v43  ;;  %v784_v4 = vshll.u32 %v1082_v52, 16 }
  0x38   : > { %v754_v1 = vrot.slane %v753_v58, 4  ;;  %v767_v3 = vor.u32 %v766_v60, %v763_v53  ;;  %v772_v5 = vrot.slane %v770_v54, 5  ;;  %v780_v9 = vrot.slane %v778_v63, 5 }
  0x39   : > { %1148 = vmatmul.mubr.msk.bf16.gmra.mrb[4].mxu1 %vm353_vm0, %v1033_v61  ;;  %v786_v14 = vrot.slane %v784_v4, 5  ;;  %v1040_v18 = vcombine.low %v1347_v24, %v1350_v25  ;;  %v1041_v19 = vcombine.low %v1374_v56, %v1381_v6  ;;  %v1042_v21 = vcombine.low %v1401_v2, %v1404_v50 }
  0x3a   : > { %v759_v10 = vsel %vm1358_vm3, %v754_v1, %v758_v59  ;;  %1153 = vmatprep.mubr.msk.bf16.mxu1 %vm353_vm0, %v1039_v16  ;;  %v768_v11 = vrot.slane %v767_v3, 4  ;;  %v781_v13 = vor.u32 %v780_v9, %v777_v62 }
  0x3b   : > { %v1087_v12 = vcombine.low %v745_v0, %v759_v10 }
  0x3c   : > { %v773_v15 = vsel %vm1358_vm3, %v768_v11, %v772_v5  ;;  %v782_v17 = vrot.slane %v781_v13, 4 }
  0x3d   : > { %1177 = vmatprep.mubr.msk.bf16.mxu0 %vm353_vm0, %v1087_v12 }
  0x3e   : > { %v787_v20 = vsel %vm1358_vm3, %v782_v17, %v786_v14 }
  0x3f   : > { %v1088_v16 = vcombine.low %v773_v15, %v787_v20 }
  0x41   : > { %1154 = vmatmul.mubr.msk.bf16.vlgmr.msra.gmra.mrb[0].mxu1 %vm353_vm0, %v1040_v18  ;;  %1178 = vmatmul.mubr.msk.bf16.gmra.mrb[4].mxu0 %vm353_vm0, %v1088_v16 }
  0x42   : > { %1157 = vmatprep.mubr.msk.bf16.mxu1 %vm353_vm0, %v1041_v19 }
  0x49   : > { %1158 = vmatmul.mubr.msk.bf16.gmra.mrb[4].mxu1 %vm353_vm0, %v1042_v21 }
 0x106   : > { %v1175_v22 = vpop.f32.mrb[0].mxu0 }
 0x107   : > { %v855_v24 = vpop.f32.mrb[1].mxu0 }
 0x108   : > { %v1176_v25 = vpop.f32.mrb[2].mxu0 }
 0x109   : > { %v858_v23 = vpop.f32.mrb[3].mxu0 }
 0x114   : > { %v1155_v56 = vpop.f32.mrb[0].mxu1  ;;  %v1179_v6 = vpop.f32.mrb[4].mxu0 }
 0x115   : > { %v1181_v26 = vadd.f32 %v1175_v22, %v1155_v56  ;;  %v503_v27 = vpop.f32.mrb[1].mxu1  ;;  %v871_v28 = vpop.f32.mrb[5].mxu0 }
 0x116   : > { %v1182_v7 = vadd.f32 %v855_v24, %v503_v27  ;;  %v1156_v8 = vpop.f32.mrb[2].mxu1  ;;  %v1180_v2 = vpop.f32.mrb[6].mxu0 }
 0x117   : > { %v903_v29 = vadd.f32 %v1181_v26, %v1094_v31  ;;  %v1183_v50 = vadd.f32 %v1176_v25, %v1156_v8  ;;  %v506_v30 = vpop.f32.mrb[3].mxu1  ;;  %v874_v33 = vpop.f32.mrb[7].mxu0 }
 0x118   : > { %v901_v32 = vadd.f32 %v1182_v7, %v1094_v31  ;;  %v1184_v34 = vadd.f32 %v858_v23, %v506_v30 }
 0x119   : > { %v904_v35 = vadd.f32 %v1183_v50, %v1094_v31  ;;  %v911_v37 = vmax.f32 %v903_v29, 0.0 }
 0x11a   : > { %v902_v36 = vadd.f32 %v1184_v34, %v1094_v31  ;;  %v909_v39 = vmax.f32 %v901_v32, 0.0 }
 0x11b   : > { %v912_v38 = vmax.f32 %v904_v35, 0.0 }
 0x11c   : > { %v910_v40 = vmax.f32 %v902_v36, 0.0  ;;  %v1159_v41 = vpop.f32.mrb[4].mxu1 }
 0x11d   : > { %v1106_v42 = vpack.c.bf16 %v912_v38, %v911_v37  ;;  %v1185_v43 = vadd.f32 %v1179_v6, %v1159_v41  ;;  %v519_v44 = vpop.f32.mrb[5].mxu1 }
 0x11e   : > { %v1101_v45 = vpack.c.bf16 %v910_v40, %v909_v39  ;;  %v1186_v46 = vadd.f32 %v871_v28, %v519_v44  ;;  %v1160_v47 = vpop.f32.mrb[6].mxu1 }
 0x11f   : > { %1118 = vst [vmem:[%s192_s6 + $0x8] sm:$0xff] %v1106_v42   ;;  %v907_v48 = vadd.f32 %v1185_v43, %v1094_v31  ;;  %v1187_v49 = vadd.f32 %v1180_v2, %v1160_v47  ;;  %v522_v51 = vpop.f32.mrb[7].mxu1 }
 0x120   : > { %1102 = vst [vmem:[%s192_s6] sm:$0xff] %v1101_v45   ;;  %v905_v52 = vadd.f32 %v1186_v46, %v1094_v31  ;;  %v1188_v53 = vadd.f32 %v874_v33, %v522_v51 }
 0x121   : > { %v908_v54 = vadd.f32 %v1187_v49, %v1094_v31  ;;  %v915_v57 = vmax.f32 %v907_v48, 0.0 }
 0x122   : > { %v906_v55 = vadd.f32 %v1188_v53, %v1094_v31  ;;  %v913_v59 = vmax.f32 %v905_v52, 0.0 }
 0x123   : > { %v916_v58 = vmax.f32 %v908_v54, 0.0 }
 0x124   : > { %v914_v60 = vmax.f32 %v906_v55, 0.0 }
 0x125   : > { %v1116_v61 = vpack.c.bf16 %v916_v58, %v915_v57 }
 0x126   : > { %v1111_v62 = vpack.c.bf16 %v914_v60, %v913_v59 }
 0x127   : > { %1120 = vst [vmem:[%s192_s6 + $0x18] sm:$0xff] %v1116_v61  }
 0x128   : > { %1119 = vst [vmem:[%s192_s6 + $0x10] sm:$0xff] %v1111_v62  }
 0x129 PF: > { %s13_s14 = sadd.s32 1, %s1264_s14   ;;  %s1480_s12 = smov %s1260_s13 }
 0x12a   : > { %p10_p5 = scmp.ge.s32.totalorder %s13_s14, 4   ;;  %s1481_s13 = smov %s1483_s15 }
 0x12c   :  { %12 = sbr.rel (!%p10_p5) target bundleno = 2 (0x2), region = 67 }

// kernel: downblock_forward.3
= control target key start
LH: loop header
LB: loop body
LE: loop exit
PB: predicated region body
PF: predicated region fallthrough
CT: control target
= control target key end

     0   :  { %s2333_s12 = smov 0   ;;  %s2335_s13 = smov 0   ;;  %s2862_s0 = inlined_call_operand.vmem [shape: bf16[2,10,10,8], index: 0, kind: input, shape index: {}]   ;;  %s2863_s1 = inlined_call_operand.vmem [shape: bf16[9,8,128], index: 1, kind: input, shape index: {}]   ;;  %s2864_s2 = inlined_call_operand.vmem [shape: f32[1,128], index: 2, kind: input, shape index: {}]   ;;  %s2865_s3 = inlined_call_operand.vmem [shape: bf16[2,8,8,128], index: 3, kind: output, shape index: {}]  }
   0x1   :  { %s2337_s14 = smov 0  }
   0x2 LB: > { %s25_s15 = sadd.s32 1, %s2307_s13  ;;  %p1842_p0 = scmp.ge.s32.totalorder %s2311_s14, 1  ;;  %s2311_s14 = sphi %s2337_s14, %s13_s14   ;;  %s2307_s13 = sphi %s2335_s13, %s2871_s13   ;;  %s2303_s12 = sphi %s2333_s12, %s2870_s12  }
   0x3   : > { %p27_p1 = scmp.ge.s32.totalorder %s25_s15, 2  ;;  %p151_p2 = scmp.lt.s32.totalorder %s2311_s14, 3 }
   0x5   : > { %s2873_s15 = smov (%p27_p1, %s25_s15), 0  ;;  %p152_p3 = pnand %p1842_p0, %p151_p2 }
   0x6   : > { %v1846_v0 = vld [vmem:[%s2863_s1 + $0x4] sm:$0xf] (!%p152_p3)  ;;  %vm358_vm0 = vcmask (!%p152_p3), 1043456   ;;  %v2357_v1 = vld [vmem:[%s2863_s1 + $0x10] sm:$0xf] (!%p152_p3)  ;;  %p179_p4 = scmp.lt.s32.totalorder (!%p152_p3), %s2303_s12, 1 }
   0x7   : > { %155 = sbr.rel (%p152_p3) target bundleno = 339 (0x153), region = 32  ;;  %2242 = vmatprep.subr.msk.bf16.mxu1 (!%p152_p3), %vm358_vm0, %v1846_v0  ;;  %2246 = vmatprep.subr.msk.bf16.mxu0 (!%p152_p3), %vm358_vm0, %v2357_v1  ;;  %v360_v2 = vsel (!%p152_p3), %vm358_vm0, %v1846_v0, 0  ;;  %v2365_v3 = vsel (!%p152_p3), %vm358_vm0, %v2357_v1, 0  ;;  %v207_v4 = vld [vmem:[%s2863_s1] sm:$0xf] (!%p152_p3)  ;;  %vm345_vm3 = vcmask (!%p152_p3), 64512  }
   0x8   : > { %2087 = vmatpush3.bf16.msra.mxu1 (!%p152_p3), %v360_v2  ;;  %2127 = vmatpush3.bf16.msra.mxu0 (!%p152_p3), %v2365_v3  ;;  %v1938_v5 = vld [vmem:[%s2863_s1 + $0x14] sm:$0xf] (!%p152_p3)  ;;  %vm216_vm1 = vsmask.f32 (!%p152_p3), 3328  ;;  %vm217_vm2 = vsmask.f32 (!%p152_p3), 7440 }
   0x9   : > { %2243 = vmatprep.subr.msk.bf16.mxu1 (!%p152_p3), %vm358_vm0, %v207_v4  ;;  %2248 = vmatprep.subr.msk.bf16.mxu0 (!%p152_p3), %vm358_vm0, %v1938_v5  ;;  %v2404_v17 = vsel (!%p152_p3), %vm358_vm0, %v207_v4, 0  ;;  %v2417_v31 = vld [vmem:[%s2863_s1 + $0x18] sm:$0xf] (!%p152_p3)  ;;  %vm2421_vm4 = vmor (!%p152_p3), %vm216_vm1, %vm217_vm2  ;;  %v2433_v42 = vsel (!%p152_p3), %vm358_vm0, %v1938_v5, 0  ;;  %vm551_vm5 = vcmask (!%p152_p3), 1042432   ;;  %vm552_vm6 = vcmask (!%p152_p3), 1046532  }
   0xa   : > { %v2440_v47 = vsel (!%p152_p3), %vm358_vm0, %v2417_v31, 0  ;;  %vm2532_vm7 = vmor (!%p152_p3), %vm551_vm5, %vm552_vm6 }
   0xe   : > { %s2875_s12 = smov (!%p179_p4, %s2303_s12), 1 }
   0xf   : > { %s2252_s24 = smul.u32 80, %s2875_s12  ;;  %s2017_s17 = sshll.u32 %s2875_s12, 5 }
  0x10   : > { %s192_s20 = scalar_lea.vmem %s2865_s3, %s2017_s17 }
  0x11   : > { %s2382_s27 = scalar_lea.vmem %s2862_s0, %s2252_s24 }
  0x12   : > { %v2385_v6 = vld [vmem:[%s2382_s27] sm:$0xf]  ;;  %v2388_v7 = vld [vmem:[%s2382_s27 + $0x8] sm:$0xf]  ;;  %v2391_v8 = vld [vmem:[%s2382_s27 + $0x4] sm:$0x1] }
  0x13   : > { %v2394_v9 = vld [vmem:[%s2382_s27 + $0xc] sm:$0x1]  ;;  %v220_v10 = vshrl.u32 %v2385_v6, 16  ;;  %v223_v11 = vshll.u32 %v2385_v6, 16  ;;  %v229_v12 = vshll.u32 %v2391_v8, 16  ;;  %v234_v13 = vshrl.u32 %v2388_v7, 16 }
  0x14   : > { %v237_v14 = vshll.u32 %v2388_v7, 16  ;;  %v243_v15 = vshll.u32 %v2394_v9, 16  ;;  %v1897_v16 = vld [vmem:[%s2382_s27 + $0x8] sm:$0xf]  ;;  %v2407_v22 = vld [vmem:[%s2382_s27 + $0xc] sm:$0x1] }
  0x15   : > { %v222_v18 = vrot.slane %v220_v10, 4  ;;  %v225_v19 = vrot.slane %v223_v11, 5  ;;  %v231_v20 = vrot.slane %v229_v12, 5  ;;  %v236_v21 = vrot.slane %v234_v13, 4  ;;  %v1899_v25 = vld [vmem:[%s2382_s27 + $0x10] sm:$0xf] }
  0x16   : > { %v239_v23 = vrot.slane %v237_v14, 5  ;;  %v245_v24 = vrot.slane %v243_v15, 5  ;;  %v2411_v26 = vld [vmem:[%s2382_s27 + $0x14] sm:$0x1]  ;;  %v827_v28 = vshrl.u32 %v1897_v16, 16  ;;  %v830_v29 = vshll.u32 %v1897_v16, 16 }
  0x17   : > { %v226_v27 = vor.u32 %v225_v19, %v222_v18  ;;  %v836_v30 = vshll.u32 %v2407_v22, 16  ;;  %v841_v34 = vshrl.u32 %v1899_v25, 16  ;;  %v844_v35 = vshll.u32 %v1899_v25, 16  ;;  %v2427_v37 = vld [vmem:[%s2382_s27 + $0x10] sm:$0xf] }
  0x18   : > { %v240_v33 = vor.u32 %v239_v23, %v236_v21  ;;  %v850_v36 = vshll.u32 %v2411_v26, 16  ;;  %v829_v39 = vrot.slane %v827_v28, 4  ;;  %v832_v40 = vrot.slane %v830_v29, 5  ;;  %v2430_v41 = vld [vmem:[%s2382_s27 + $0x18] sm:$0xf] }
  0x19   : > { %v227_v38 = vrot.slane %v226_v27, 4  ;;  %v843_v44 = vrot.slane %v841_v34, 4  ;;  %v846_v45 = vrot.slane %v844_v35, 5  ;;  %v2436_v46 = vld [vmem:[%s2382_s27 + $0x14] sm:$0x1]  ;;  %v838_v50 = vrot.slane %v836_v30, 5 }
  0x1a   : > { %v241_v43 = vrot.slane %v240_v33, 4  ;;  %v833_v49 = vor.u32 %v832_v40, %v829_v39  ;;  %v852_v51 = vrot.slane %v850_v36, 5  ;;  %v2447_v54 = vld [vmem:[%s2382_s27 + $0x1c] sm:$0x1]  ;;  %v248_v55 = vshrl.u32 %v2427_v37, 16 }
  0x1b   : > { %v232_v48 = vsel %vm2421_vm4, %v227_v38, %v231_v20  ;;  %v847_v53 = vor.u32 %v846_v45, %v843_v44  ;;  %v251_v56 = vshll.u32 %v2427_v37, 16  ;;  %v257_v59 = vshll.u32 %v2436_v46, 16  ;;  %v1901_v2 = vld [vmem:[%s2382_s27 + $0x18] sm:$0xf]  ;;  %v2461_v12 = vld [vmem:[%s2382_s27 + $0x1c] sm:$0x1] }
  0x1c   : > { %v246_v52 = vsel %vm2421_vm4, %v241_v43, %v245_v24  ;;  %v834_v58 = vrot.slane %v833_v49, 4  ;;  %v262_v60 = vshrl.u32 %v2430_v41, 16  ;;  %v250_v62 = vrot.slane %v248_v55, 4  ;;  %v1903_v18 = vld [vmem:[%s2382_s27 + $0x20] sm:$0xf] }
  0x1d   : > { %v1847_v57 = vcombine.low %v232_v48, %v246_v52  ;;  %v848_v61 = vrot.slane %v847_v53, 4  ;;  %v253_v63 = vrot.slane %v251_v56, 5  ;;  %v265_v0 = vshll.u32 %v2430_v41, 16  ;;  %v2467_v19 = vld [vmem:[%s2382_s27 + $0x24] sm:$0x1] }
  0x1e   : > { %v839_v4 = vsel %vm2421_vm4, %v834_v58, %v838_v50  ;;  %v1066_v5 = vrot.slane %v2407_v22, 5  ;;  %v264_v10 = vrot.slane %v262_v60, 4  ;;  %v271_v11 = vshll.u32 %v2447_v54, 16  ;;  %v2474_v36 = vld [vmem:[%s2382_s27 + $0x20] sm:$0xf] }
  0x1f   : > { %2088 = vmatprep.mubr.msk.bf16.mxu1 %vm345_vm3, %v1847_v57  ;;  %v853_v13 = vsel %vm2421_vm4, %v848_v61, %v852_v51  ;;  %v254_v14 = vor.u32 %v253_v63, %v250_v62  ;;  %v259_v15 = vrot.slane %v257_v59, 5  ;;  %v267_v16 = vrot.slane %v265_v0, 5  ;;  %v2479_v44 = vld [vmem:[%s2382_s27 + $0x24] sm:$0x1]  ;;  %v2483_v51 = vld [vmem:[%s2382_s27 + $0x28] sm:$0xf] }
  0x20   : > { %v1914_v20 = vcombine.low %v839_v4, %v853_v13  ;;  %v1070_v21 = vrot.slane %v2411_v26, 5  ;;  %v273_v23 = vrot.slane %v271_v11, 5  ;;  %v855_v24 = vshrl.u32 %v1901_v2, 16  ;;  %v2489_v56 = vld [vmem:[%s2382_s27 + $0x2c] sm:$0x1] }
  0x21   : > { %v255_v25 = vrot.slane %v254_v14, 4  ;;  %v268_v27 = vor.u32 %v267_v16, %v264_v10  ;;  %v858_v28 = vshll.u32 %v1901_v2, 16  ;;  %v864_v29 = vshll.u32 %v2461_v12, 16  ;;  %v2495_v62 = vld [vmem:[%s2382_s27 + $0x30] sm:$0xf] }
  0x22   : > { %2128 = vmatprep.mubr.msk.bf16.mxu0 %vm345_vm3, %v1914_v20  ;;  %v857_v30 = vrot.slane %v855_v24, 4  ;;  %v869_v33 = vshrl.u32 %v1903_v18, 16  ;;  %v872_v34 = vshll.u32 %v1903_v18, 16  ;;  %v878_v35 = vshll.u32 %v2467_v19, 16  ;;  %v2500_v63 = vld [vmem:[%s2863_s1 + $0x8] sm:$0xf] }
  0x23   : > { %v260_v38 = vsel %vm2421_vm4, %v255_v25, %v259_v15  ;;  %v269_v39 = vrot.slane %v268_v27, 4  ;;  %v860_v40 = vrot.slane %v858_v28, 5  ;;  %v866_v43 = vrot.slane %v864_v29, 5  ;;  %v2505_v11 = vld [vmem:[%s2382_s27 + $0x38] sm:$0xf] }
  0x24   : > { %v871_v45 = vrot.slane %v869_v33, 4  ;;  %v874_v48 = vrot.slane %v872_v34, 5  ;;  %v880_v49 = vrot.slane %v878_v35, 5  ;;  %v1074_v50 = vrot.slane %v2461_v12, 5  ;;  %v2510_v18 = vld [vmem:[%s2382_s27 + $0x34] sm:$0x1] }
  0x25   : > { %v274_v52 = vsel %vm2421_vm4, %v269_v39, %v273_v23  ;;  %v861_v53 = vor.u32 %v860_v40, %v857_v30  ;;  %v1078_v55 = vrot.slane %v2467_v19, 5  ;;  %v276_v57 = vshrl.u32 %v2474_v36, 16  ;;  %v2516_v25 = vld [vmem:[%s2382_s27 + $0x3c] sm:$0x1]  ;;  %v1922_v34 = vld [vmem:[%s2382_s27 + $0x8] sm:$0xe] }
  0x26   : > { %v1848_v58 = vcombine.low %v260_v38, %v274_v52  ;;  %v875_v59 = vor.u32 %v874_v48, %v871_v45  ;;  %v279_v60 = vshll.u32 %v2474_v36, 16  ;;  %v285_v61 = vshll.u32 %v2479_v44, 16  ;;  %v2585_v19 = vld [vmem:[%s2382_s27 + $0x44] sm:$0x1] }
  0x27   : > { %v862_v0 = vrot.slane %v861_v53, 4  ;;  %v278_v2 = vrot.slane %v276_v57, 4  ;;  %v290_v4 = vshrl.u32 %v2483_v51, 16  ;;  %v293_v10 = vshll.u32 %v2483_v51, 16  ;;  %v1925_v57 = vld [vmem:[%s2382_s27 + $0x20] sm:$0xe] }
  0x28   : > { %2089 = vmatmul.mubr.msk.bf16.vlgmr.msra.gmra.mrb[0].mxu1 %vm345_vm3, %v1848_v58  ;;  %v876_v13 = vrot.slane %v875_v59, 4  ;;  %v281_v14 = vrot.slane %v279_v60, 5  ;;  %v287_v15 = vrot.slane %v285_v61, 5  ;;  %v299_v16 = vshll.u32 %v2489_v56, 16  ;;  %v2014_v53 = vld [vmem:[%s2864_s2] ss:$0 sm:$0xff] }
  0x29   : > { %2097 = vmatpush3.bf16.msra.mxu1 %v2404_v17  ;;  %v867_v20 = vsel %vm2421_vm4, %v862_v0, %v866_v43  ;;  %v292_v23 = vrot.slane %v290_v4, 4  ;;  %v295_v24 = vrot.slane %v293_v10, 5  ;;  %v304_v27 = vshrl.u32 %v2495_v62, 16  ;;  %v1923_v17 = vld [vmem:[%s2382_s27 + $0x10] sm:$0xe] }
  0x2a   : > { %v881_v28 = vsel %vm2421_vm4, %v876_v13, %v880_v49  ;;  %v282_v29 = vor.u32 %v281_v14, %v278_v2  ;;  %v301_v30 = vrot.slane %v299_v16, 5  ;;  %v307_v33 = vshll.u32 %v2495_v62, 16  ;;  %2244 = vmatprep.subr.msk.bf16.mxu1 %vm358_vm0, %v2500_v63  ;;  %v1924_v43 = vld [vmem:[%s2382_s27 + $0x18] sm:$0xe]  ;;  %v1926_v0 = vld [vmem:[%s2382_s27 + $0x28] sm:$0xe] }
  0x2b   : > { %v1915_v35 = vcombine.low %v867_v20, %v881_v28  ;;  %v296_v38 = vor.u32 %v295_v24, %v292_v23  ;;  %v306_v39 = vrot.slane %v304_v27, 4  ;;  %v313_v40 = vshll.u32 %v2510_v18, 16 }
  0x2c   : > { %v283_v45 = vrot.slane %v282_v29, 4  ;;  %v309_v48 = vrot.slane %v307_v33, 5  ;;  %v318_v49 = vshrl.u32 %v2505_v11, 16  ;;  %v321_v52 = vshll.u32 %v2505_v11, 16  ;;  %v2555_v29 = vld [vmem:[%s2382_s27 + $0x34] sm:$0x1] }
  0x2d   : > { %2129 = vmatmul.mubr.msk.bf16.vlgmr.msra.gmra.mrb[0].mxu0 %vm345_vm3, %v1915_v35  ;;  %v297_v58 = vrot.slane %v296_v38, 4  ;;  %v315_v59 = vrot.slane %v313_v40, 5  ;;  %v327_v60 = vshll.u32 %v2516_v25, 16  ;;  %v1930_v61 = vrot.slane %v1922_v34, 9  ;;  %v1928_v38 = vld [vmem:[%s2382_s27 + $0x38] sm:$0xe] }
  0x2e   : > { %2137 = vmatpush3.bf16.msra.mxu0 %v2433_v42  ;;  %v288_v2 = vsel %vm2421_vm4, %v283_v45, %v287_v15  ;;  %v310_v4 = vor.u32 %v309_v48, %v306_v39  ;;  %v320_v10 = vrot.slane %v318_v49, 4  ;;  %v323_v13 = vrot.slane %v321_v52, 5  ;;  %v2552_v42 = vld [vmem:[%s2382_s27 + $0x2c] sm:$0x1]  ;;  %v1929_v45 = vld [vmem:[%s2382_s27 + $0x40] sm:$0xe] }
  0x2f   : > { %v302_v14 = vsel %vm2421_vm4, %v297_v58, %v301_v30  ;;  %v329_v16 = vrot.slane %v327_v60, 5  ;;  %v1067_v20 = vsel %vm2532_vm7, %v1930_v61, %v1066_v5  ;;  %v1931_v23 = vrot.slane %v1923_v17, 9  ;;  %2249 = vmatprep.subr.msk.bf16.mxu0 %vm358_vm0, %v2417_v31  ;;  %v1927_v30 = vld [vmem:[%s2382_s27 + $0x30] sm:$0xe]  ;;  %v2563_v31 = vld [vmem:[%s2382_s27 + $0x3c] sm:$0x1] }
  0x30   : > { %v1849_v15 = vcombine.low %v288_v2, %v302_v14  ;;  %v311_v24 = vrot.slane %v310_v4, 4  ;;  %v324_v27 = vor.u32 %v323_v13, %v320_v10  ;;  %v1932_v28 = vrot.slane %v1924_v43, 9  ;;  %v2594_v48 = vld [vmem:[%s2863_s1 + $0xc] sm:$0xf]  ;;  %v528_v58 = vld [vmem:[%s2382_s27 + $0x8] sm:$0xe] }
  0x31   : > { %v1071_v22 = vsel %vm2532_vm7, %v1931_v23, %v1070_v21  ;;  %v1933_v5 = vrot.slane %v1925_v57, 9  ;;  %v1934_v33 = vrot.slane %v1926_v0, 9  ;;  %v1082_v39 = vrot.slane %v2552_v42, 5  ;;  %v530_v4 = vld [vmem:[%s2382_s27 + $0x18] sm:$0xe] }
  0x32   : > { %2092 = vmatprep.mubr.msk.bf16.mxu1 %vm345_vm3, %v1849_v15  ;;  %v316_v34 = vsel %vm2421_vm4, %v311_v24, %v315_v59  ;;  %v325_v17 = vrot.slane %v324_v27, 4  ;;  %v1939_v35 = vcombine.low %v1067_v20, %v1071_v22  ;;  %v1075_v26 = vsel %vm2532_vm7, %v1932_v28, %v1074_v50  ;;  %v529_v59 = vld [vmem:[%s2382_s27 + $0x10] sm:$0xe]  ;;  %v531_v20 = vld [vmem:[%s2382_s27 + $0x20] sm:$0xe] }
  0x33   : > { %v1079_v21 = vsel %vm2532_vm7, %v1933_v5, %v1078_v55  ;;  %v1935_v40 = vrot.slane %v1927_v30, 9  ;;  %v1086_v43 = vrot.slane %v2555_v29, 5  ;;  %v1855_v50 = vcombine.low %v2385_v6, %v2388_v7  ;;  %v1980_v55 = vld [vmem:[%s2863_s1 + $0x1c] sm:$0xf]  ;;  %v527_v7 = vld [vmem:[%s2382_s27] sm:$0xe] }
  0x34   : > { %v330_v12 = vsel %vm2421_vm4, %v325_v17, %v329_v16  ;;  %2138 = vmatprep.mubr.msk.bf16.mxu0 %vm345_vm3, %v1939_v35  ;;  %v1940_v52 = vcombine.low %v1075_v26, %v1079_v21  ;;  %v1083_v57 = vsel %vm2532_vm7, %v1934_v33, %v1082_v39  ;;  %v556_v60 = vrot.slane %v2391_v8, 5  ;;  %v1964_v5 = vld [vmem:[%s2382_s27 + $0x10] sm:$0xf]  ;;  %v532_v17 = vld [vmem:[%s2382_s27 + $0x28] sm:$0xe] }
  0x35   : > { %v1850_v49 = vcombine.low %v316_v34, %v330_v12  ;;  %v1087_v6 = vsel %vm2532_vm7, %v1935_v40, %v1086_v43  ;;  %v1936_v0 = vrot.slane %v1928_v38, 9  ;;  %v1090_v2 = vrot.slane %v2563_v31, 5  ;;  %v533_v35 = vld [vmem:[%s2382_s27 + $0x30] sm:$0xe]  ;;  %v1966_v26 = vld [vmem:[%s2382_s27 + $0x18] sm:$0xf] }
  0x36   : > { %v1941_v61 = vcombine.low %v1083_v57, %v1087_v6  ;;  %v560_v10 = vrot.slane %v2394_v9, 5  ;;  %v564_v13 = vrot.slane %v2436_v46, 5  ;;  %v1937_v14 = vrot.slane %v1929_v45, 9  ;;  %v2281_v38 = vld [vmem:[%s2382_s27 + $0x10] ss:$8 sps:$4 sm:$0xff]  }
  0x37   : > { %2093 = vmatmul.mubr.msk.bf16.gmra.mrb[4].mxu1 %vm345_vm3, %v1850_v49  ;;  %v1094_v16 = vrot.slane %v2585_v19, 5  ;;  %v568_v23 = vrot.slane %v2447_v54, 5  ;;  %v1863_v8 = vrot.slane %v527_v7, 9  ;;  %v1864_v15 = vrot.slane %v528_v58, 9  ;;  %v2657_v21 = vld [vmem:[%s2382_s27 + $0x38] sm:$0xe] }
  0x38   : > { %2098 = vmatprep.mubr.msk.bf16.mxu1 %vm345_vm3, %v1855_v50  ;;  %v1865_v24 = vrot.slane %v529_v59, 9  ;;  %v613_v9 = vsel %vm358_vm0, %v2500_v63, 0  ;;  %v2617_v46 = vsel %vm358_vm0, %v1980_v55, 0  ;;  %v1866_v27 = vrot.slane %v530_v4, 9  ;;  %v2660_v39 = vld [vmem:[%s2382_s27 + $0x14] sm:$0x1] }
  0x39   : > { %2139 = vmatmul.mubr.msk.bf16.vlgmr.msra.gmra.mrb[0].mxu0 %vm345_vm3, %v1940_v52  ;;  %v2621_v54 = vsel %vm358_vm0, %v2594_v48, 0  ;;  %v1091_v28 = vsel %vm2532_vm7, %v1936_v0, %v1090_v2  ;;  %v1095_v63 = vsel %vm2532_vm7, %v1937_v14, %v1094_v16  ;;  %v1867_v30 = vrot.slane %v531_v20, 9  ;;  %v1970_v52 = vld [vmem:[%s2382_s27 + $0x28] sm:$0xf]  ;;  %v2679_v59 = vld [vmem:[%s2382_s27 + $0x1c] sm:$0x1] }
  0x3a   : > { %2147 = vmatpush3.bf16.msra.mxu0 %v2440_v47  ;;  %2142 = vmatprep.mubr.msk.bf16.mxu0 %vm345_vm3, %v1941_v61  ;;  %v572_v22 = vrot.slane %v2479_v44, 5  ;;  %v1856_v33 = vcombine.low %v2427_v37, %v2430_v41  ;;  %v2636_v47 = vsel %vm2532_vm7, %v1863_v8, %v556_v60  ;;  %v2640_v34 = vsel %vm2532_vm7, %v1864_v15, %v560_v10  ;;  %v2687_v2 = vld [vmem:[%s2382_s27 + $0x24] sm:$0x1]  ;;  %v1972_v20 = vld [vmem:[%s2382_s27 + $0x30] sm:$0xf] }
  0x3b   : > { %2250 = vmatprep.subr.msk.bf16.mxu0 %vm358_vm0, %v1980_v55  ;;  %v1857_v44 = vcombine.low %v2474_v36, %v2483_v51  ;;  %v2650_v37 = vsel %vm2532_vm7, %v1865_v24, %v564_v13  ;;  %v2654_v41 = vsel %vm2532_vm7, %v1866_v27, %v568_v23  ;;  %v1942_v40 = vcombine.low %v1091_v28, %v1095_v63  ;;  %v1968_v36 = vld [vmem:[%s2382_s27 + $0x20] sm:$0xf]  ;;  %v2698_v15 = vld [vmem:[%s2382_s27 + $0x2c] sm:$0x1]  ;;  %v2283_v27 = vld [vmem:[%s2382_s27 + $0x30] ss:$8 sps:$4 sm:$0xff]  }
  0x3c   : > { %v1858_v43 = vcombine.low %v2495_v62, %v2505_v11  ;;  %v1337_v12 = vshrl.u32 %v1964_v5, 16  ;;  %v1340_v50 = vshll.u32 %v1964_v5, 16  ;;  %v1872_v51 = vcombine.low %v2636_v47, %v2640_v34  ;;  %v2282_v23 = vld [vmem:[%s2382_s27 + $0x20] ss:$8 sps:$4 sm:$0xff]   ;;  %v1974_v5 = vld [vmem:[%s2382_s27 + $0x38] sm:$0xf] }
  0x3d   : > { %v2669_v45 = vsel %vm2532_vm7, %v1867_v30, %v572_v22  ;;  %v1868_v55 = vrot.slane %v532_v17, 9  ;;  %v1351_v49 = vshrl.u32 %v1966_v26, 16  ;;  %v1873_v62 = vcombine.low %v2650_v37, %v2654_v41  ;;  %v2709_v17 = vld [vmem:[%s2382_s27 + $0x34] sm:$0x1] }
  0x3e   : > { %v576_v11 = vrot.slane %v2489_v56, 5  ;;  %v1339_v57 = vrot.slane %v1337_v12, 4  ;;  %v1342_v6 = vrot.slane %v1340_v50, 5  ;;  %v1869_v7 = vrot.slane %v533_v35, 9  ;;  %v1976_v12 = vld [vmem:[%s2382_s27 + $0x40] sm:$0xf] }
  0x3f   : > { %2099 = vmatmul.mubr.msk.bf16.vlgmr.msra.gmra.mrb[0].mxu1 %vm345_vm3, %v1856_v33  ;;  %v580_v58 = vrot.slane %v2510_v18, 5  ;;  %v1353_v60 = vrot.slane %v1351_v49, 4  ;;  %v1354_v61 = vshll.u32 %v1966_v26, 16  ;;  %v1870_v56 = vrot.slane %v2657_v21, 9  ;;  %v2719_v21 = vld [vmem:[%s2382_s27 + $0x3c] sm:$0x1] }
  0x40   : > { %2107 = vmatpush3.bf16.msra.mxu1 %v613_v9  ;;  %2102 = vmatprep.mubr.msk.bf16.mxu1 %vm345_vm3, %v1857_v44  ;;  %v1346_v0 = vshll.u32 %v2660_v39, 16  ;;  %v1365_v18 = vshrl.u32 %v1968_v36, 16  ;;  %v1368_v4 = vshll.u32 %v1968_v36, 16  ;;  %v1343_v10 = vor.u32 %v1342_v6, %v1339_v57  ;;  %v1978_v6 = vld [vmem:[%s2382_s27 + $0x48] sm:$0xf] }
  0x41   : > { %2143 = vmatmul.mubr.msk.bf16.gmra.mrb[4].mxu0 %vm345_vm3, %v1942_v40  ;;  %2245 = vmatprep.subr.msk.bf16.mxu1 %vm358_vm0, %v2594_v48  ;;  %v1356_v13 = vrot.slane %v1354_v61, 5  ;;  %v1379_v14 = vshrl.u32 %v1970_v52, 16  ;;  %v1382_v16 = vshll.u32 %v1970_v52, 16  ;;  %v2694_v48 = vsel %vm2532_vm7, %v1868_v55, %v576_v11 }
  0x42   : > { %2148 = vmatprep.mubr.msk.bf16.mxu0 %vm345_vm3, %v2281_v38  ;;  %v1360_v8 = vshll.u32 %v2679_v59, 16  ;;  %v1367_v24 = vrot.slane %v1365_v18, 4  ;;  %v1370_v9 = vrot.slane %v1368_v4, 5  ;;  %v584_v28 = vrot.slane %v2516_v25, 5  ;;  %v2716_v25 = vld [vmem:[%s2863_s1 + $0x20] sm:$0xf] }
  0x43   : > { %v1357_v63 = vor.u32 %v1356_v13, %v1353_v60  ;;  %v1381_v30 = vrot.slane %v1379_v14, 4  ;;  %v1384_v22 = vrot.slane %v1382_v16, 5  ;;  %v2705_v33 = vsel %vm2532_vm7, %v1869_v7, %v580_v58  ;;  %v2744_v13 = vld [vmem:[%s2382_s27 + $0x44] sm:$0x1] }
  0x44   : > { %v1348_v47 = vrot.slane %v1346_v0, 5  ;;  %v1374_v34 = vshll.u32 %v2687_v2, 16  ;;  %v1393_v35 = vshrl.u32 %v1972_v20, 16  ;;  %v1874_v26 = vcombine.low %v2669_v45, %v2694_v48 }
  0x45   : > { %v1344_v44 = vrot.slane %v1343_v10, 4  ;;  %v1371_v38 = vor.u32 %v1370_v9, %v1367_v24  ;;  %v1396_v40 = vshll.u32 %v1972_v20, 16  ;;  %v1358_v50 = vrot.slane %v1357_v63, 4  ;;  %v2747_v20 = vld [vmem:[%s2382_s27 + $0x4c] sm:$0x1] }
  0x46   : > { %v1362_v36 = vrot.slane %v1360_v8, 5  ;;  %v1395_v55 = vrot.slane %v1393_v35, 4  ;;  %v1407_v49 = vshrl.u32 %v1974_v5, 16  ;;  %v2726_v45 = vsel %vm2532_vm7, %v1870_v56, %v584_v28  ;;  %v2284_v8 = vld [vmem:[%s2382_s27 + $0x40] ss:$8 sps:$4 sm:$0xff]  }
  0x47   : > { %2103 = vmatmul.mubr.msk.bf16.gmra.mrb[4].mxu1 %vm345_vm3, %v1858_v43  ;;  %v1385_v52 = vor.u32 %v1384_v22, %v1381_v30  ;;  %v1388_v11 = vshll.u32 %v2698_v15, 16  ;;  %v1398_v57 = vrot.slane %v1396_v40, 5  ;;  %v2731_v7 = vrot.slane %v1374_v34, 5 }
  0x48   : > { %2108 = vmatprep.mubr.msk.bf16.mxu1 %vm345_vm3, %v1872_v51  ;;  %v1402_v43 = vshll.u32 %v2709_v17, 16  ;;  %v1409_v58 = vrot.slane %v1407_v49, 4  ;;  %v1410_v60 = vshll.u32 %v1974_v5, 16  ;;  %v1349_v51 = vsel %vm2421_vm4, %v1344_v44, %v1348_v47  ;;  %v1907_v49 = vld [vmem:[%s2382_s27 + $0x30] sm:$0xf] }
  0x49   : > { %2149 = vmatmul.mubr.msk.bf16.vlgmr.msra.gmra.mrb[0].mxu0 %vm345_vm3, %v2282_v23  ;;  %v1372_v61 = vrot.slane %v1371_v38, 4  ;;  %v1399_v56 = vor.u32 %v1398_v57, %v1395_v55  ;;  %v1421_v0 = vshrl.u32 %v1976_v12, 16  ;;  %v1363_v18 = vsel %vm2421_vm4, %v1358_v50, %v1362_v36  ;;  %v1989_v38 = vld [vmem:[%s2382_s27 + $0x10] sm:$0xe]  ;;  %v1990_v50 = vld [vmem:[%s2382_s27 + $0x18] sm:$0xe] }
  0x4a   : > { %2157 = vmatpush3.bf16.msra.mxu0 %v2617_v46  ;;  %2152 = vmatprep.mubr.msk.bf16.mxu0 %vm345_vm3, %v2283_v27  ;;  %v1412_v4 = vrot.slane %v1410_v60, 5  ;;  %v1416_v10 = vshll.u32 %v2719_v21, 16  ;;  %v1424_v46 = vshll.u32 %v1976_v12, 16  ;;  %v1386_v14 = vrot.slane %v1385_v52, 4  ;;  %v2285_v57 = vld [vmem:[%s2382_s27 + $0x8] ss:$8 sps:$4 sm:$0xff]  }
  0x4b   : > { %2251 = vmatprep.subr.msk.bf16.mxu0 %vm358_vm0, %v2716_v25  ;;  %v1390_v16 = vrot.slane %v1388_v11, 5  ;;  %v1423_v23 = vrot.slane %v1421_v0, 4  ;;  %v1435_v48 = vshrl.u32 %v1978_v6, 16  ;;  %v1404_v24 = vrot.slane %v1402_v43, 5 }
  0x4c   : > { %v1413_v9 = vor.u32 %v1412_v4, %v1409_v58  ;;  %v1426_v27 = vrot.slane %v1424_v46, 5  ;;  %v1438_v28 = vshll.u32 %v1978_v6, 16  ;;  %v1981_v63 = vcombine.low %v1349_v51, %v1363_v18 }
  0x4d   : > { %v1400_v30 = vrot.slane %v1399_v56, 4  ;;  %v1430_v22 = vshll.u32 %v2744_v13, 16  ;;  %v1437_v5 = vrot.slane %v1435_v48, 4  ;;  %v1418_v34 = vrot.slane %v1416_v10, 5 }
  0x4e   : > { %v1414_v47 = vrot.slane %v1413_v9, 4  ;;  %v1440_v35 = vrot.slane %v1438_v28, 5  ;;  %v1444_v44 = vshll.u32 %v2747_v20, 16  ;;  %v1875_v40 = vcombine.low %v2705_v33, %v2726_v45  ;;  %v1911_v28 = vld [vmem:[%s2382_s27 + $0x40] sm:$0xf] }
  0x4f   : > { %2109 = vmatmul.mubr.msk.bf16.vlgmr.msra.gmra.mrb[0].mxu1 %vm345_vm3, %v1873_v62  ;;  %v1427_v12 = vor.u32 %v1426_v27, %v1423_v23  ;;  %v1377_v37 = vsel %vm2421_vm4, %v1372_v61, %v2731_v7  ;;  %v1391_v41 = vsel %vm2421_vm4, %v1386_v14, %v1390_v16  ;;  %v1905_v62 = vld [vmem:[%s2382_s27 + $0x28] sm:$0xf]  ;;  %v1405_v33 = vsel %vm2421_vm4, %v1400_v30, %v1404_v24  ;;  %v1909_v27 = vld [vmem:[%s2382_s27 + $0x38] sm:$0xf] }
  0x50   : > { %2117 = vmatpush3.bf16.msra.mxu1 %v2621_v54  ;;  %2112 = vmatprep.mubr.msk.bf16.mxu1 %vm345_vm3, %v1874_v26  ;;  %v1441_v54 = vor.u32 %v1440_v35, %v1437_v5  ;;  %v1432_v26 = vrot.slane %v1430_v22, 5  ;;  %v1997_v36 = vrot.slane %v1989_v38, 9  ;;  %v1576_v55 = vrot.slane %v2660_v39, 5  ;;  %v2287_v38 = vld [vmem:[%s2382_s27 + $0x28] ss:$8 sps:$4 sm:$0xff]  }
  0x51   : > { %2153 = vmatmul.mubr.msk.bf16.gmra.mrb[4].mxu0 %vm345_vm3, %v2284_v8  ;;  %2247 = vmatprep.subr.msk.bf16.mxu1 %vm358_vm0, %v2357_v1  ;;  %v1419_v45 = vsel %vm2421_vm4, %v1414_v47, %v1418_v34  ;;  %v1446_v52 = vrot.slane %v1444_v44, 5  ;;  %v1998_v11 = vrot.slane %v1990_v50, 9  ;;  %v1580_v1 = vrot.slane %v2679_v59, 5  ;;  %v1991_v59 = vld [vmem:[%s2382_s27 + $0x20] sm:$0xe] }
  0x52   : > { %2158 = vmatprep.mubr.msk.bf16.mxu0 %vm345_vm3, %v1981_v63  ;;  %v1428_v6 = vrot.slane %v1427_v12, 4  ;;  %v1442_v7 = vrot.slane %v1441_v54, 4  ;;  %v883_v43 = vshrl.u32 %v1905_v62, 16  ;;  %v886_v58 = vshll.u32 %v1905_v62, 16  ;;  %v2286_v63 = vld [vmem:[%s2382_s27 + $0x18] ss:$8 sps:$4 sm:$0xff]  }
  0x53   : > { %v1982_v60 = vcombine.low %v1377_v37, %v1391_v41  ;;  %v897_v51 = vshrl.u32 %v1907_v49, 16  ;;  %v900_v61 = vshll.u32 %v1907_v49, 16  ;;  %v1983_v56 = vcombine.low %v1405_v33, %v1419_v45  ;;  %v1993_v44 = vld [vmem:[%s2382_s27 + $0x30] sm:$0xe] }
  0x54   : > { %v885_v39 = vrot.slane %v883_v43, 4  ;;  %v888_v0 = vrot.slane %v886_v58, 5  ;;  %v1633_v18 = vsel %vm358_vm0, %v2716_v25, 0  ;;  %v1433_v46 = vsel %vm2421_vm4, %v1428_v6, %v1432_v26  ;;  %v1992_v25 = vld [vmem:[%s2382_s27 + $0x28] sm:$0xe] }
  0x55   : > { %v899_v4 = vrot.slane %v897_v51, 4  ;;  %v902_v10 = vrot.slane %v900_v61, 5  ;;  %v1447_v14 = vsel %vm2421_vm4, %v1442_v7, %v1446_v52  ;;  %v1577_v16 = vsel %vm2532_vm7, %v1997_v36, %v1576_v55  ;;  %v1995_v6 = vld [vmem:[%s2382_s27 + $0x40] sm:$0xe]  ;;  %v1996_v7 = vld [vmem:[%s2382_s27 + $0x48] sm:$0xe] }
  0x56   : > { %v1581_v23 = vsel %vm2532_vm7, %v1998_v11, %v1580_v1  ;;  %v889_v48 = vor.u32 %v888_v0, %v885_v39  ;;  %v892_v8 = vshll.u32 %v2552_v42, 16  ;;  %v906_v9 = vshll.u32 %v2555_v29, 16  ;;  %v1994_v42 = vld [vmem:[%s2382_s27 + $0x38] sm:$0xe] }
  0x57   : > { %2113 = vmatmul.mubr.msk.bf16.gmra.mrb[4].mxu1 %vm345_vm3, %v1875_v40  ;;  %v903_v24 = vor.u32 %v902_v10, %v899_v4  ;;  %v1999_v30 = vrot.slane %v1991_v59, 9  ;;  %v1584_v22 = vrot.slane %v2687_v2, 5  ;;  %v1984_v5 = vcombine.low %v1433_v46, %v1447_v14 }
  0x58   : > { %2118 = vmatprep.mubr.msk.bf16.mxu1 %vm345_vm3, %v2285_v57  ;;  %v2006_v47 = vcombine.low %v1577_v16, %v1581_v23  ;;  %v2000_v34 = vrot.slane %v1992_v25, 9  ;;  %v1588_v35 = vrot.slane %v2698_v15, 5  ;;  %v911_v40 = vshrl.u32 %v1909_v27, 16  ;;  %v2288_v57 = vld [vmem:[%s2382_s27 + $0x38] ss:$8 sps:$4 sm:$0xff]  }
  0x59   : > { %2159 = vmatmul.mubr.msk.bf16.vlgmr.msra.gmra.mrb[0].mxu0 %vm345_vm3, %v1982_v60  ;;  %v914_v12 = vshll.u32 %v1909_v27, 16  ;;  %v925_v29 = vshrl.u32 %v1911_v28, 16  ;;  %v928_v50 = vshll.u32 %v1911_v28, 16  ;;  %v890_v37 = vrot.slane %v889_v48, 4 }
  0x5a   : > { %2167 = vmatpush3.bf16.msra.mxu0 %v1633_v18  ;;  %2162 = vmatprep.mubr.msk.bf16.mxu0 %vm345_vm3, %v1983_v56  ;;  %v894_v41 = vrot.slane %v892_v8, 5  ;;  %v904_v54 = vrot.slane %v903_v24, 4  ;;  %v908_v62 = vrot.slane %v906_v9, 5  ;;  %v2001_v33 = vrot.slane %v1993_v44, 9 }
  0x5b   : > { %v1592_v26 = vrot.slane %v2709_v17, 5  ;;  %v2002_v2 = vrot.slane %v1994_v42, 9  ;;  %v1596_v36 = vrot.slane %v2719_v21, 5  ;;  %v913_v15 = vrot.slane %v911_v40, 4 }
  0x5c   : > { %v916_v55 = vrot.slane %v914_v12, 5  ;;  %v927_v49 = vrot.slane %v925_v29, 4  ;;  %v930_v45 = vrot.slane %v928_v50, 5  ;;  %v920_v52 = vshll.u32 %v2563_v31, 16 }
  0x5d   : > { %v895_v17 = vsel %vm2421_vm4, %v890_v37, %v894_v41  ;;  %v909_v21 = vsel %vm2421_vm4, %v904_v54, %v908_v62  ;;  %v1589_v11 = vsel %vm2532_vm7, %v2000_v34, %v1588_v35  ;;  %v1593_v1 = vsel %vm2532_vm7, %v2001_v33, %v1592_v26 }
  0x5e   : > { %v1597_v31 = vsel %vm2532_vm7, %v2002_v2, %v1596_v36  ;;  %v934_v43 = vshll.u32 %v2585_v19, 16  ;;  %v1916_v58 = vcombine.low %v895_v17, %v909_v21  ;;  %v917_v60 = vor.u32 %v916_v55, %v913_v15 }
  0x5f   : > { %2119 = vmatmul.mubr.msk.bf16.vlgmr.msra.gmra.mrb[0].mxu1 %vm345_vm3, %v2286_v63  ;;  %v931_v51 = vor.u32 %v930_v45, %v927_v49  ;;  %v2008_v56 = vcombine.low %v1593_v1, %v1597_v31  ;;  %v2003_v39 = vrot.slane %v1995_v6, 9  ;;  %v1600_v0 = vrot.slane %v2744_v13, 5 }
  0x60   : > { %2177 = vmatpush3.bf16.msra.mxu1 %v2365_v3  ;;  %2122 = vmatprep.mubr.msk.bf16.mxu1 %vm345_vm3, %v2287_v38  ;;  %v1585_v3 = vsel %vm2532_vm7, %v1999_v30, %v1584_v22  ;;  %v2004_v18 = vrot.slane %v1996_v7, 9  ;;  %v1604_v59 = vrot.slane %v2747_v20, 5  ;;  %v922_v4 = vrot.slane %v920_v52, 5 }
  0x61   : > { %2163 = vmatmul.mubr.msk.bf16.gmra.mrb[4].mxu0 %vm345_vm3, %v1984_v5  ;;  %v2007_v61 = vcombine.low %v1585_v3, %v1589_v11  ;;  %v936_v10 = vrot.slane %v934_v43, 5  ;;  %v918_v46 = vrot.slane %v917_v60, 4  ;;  %v932_v14 = vrot.slane %v931_v51, 4 }
  0x62   : > { %2168 = vmatprep.mubr.msk.bf16.mxu0 %vm345_vm3, %v2006_v47  ;;  %v1601_v19 = vsel %vm2532_vm7, %v2003_v39, %v1600_v0  ;;  %v1605_v13 = vsel %vm2532_vm7, %v2004_v18, %v1604_v59 }
  0x63   : > { %v923_v20 = vsel %vm2421_vm4, %v918_v46, %v922_v4  ;;  %v937_v16 = vsel %vm2421_vm4, %v932_v14, %v936_v10  ;;  %v2009_v23 = vcombine.low %v1601_v19, %v1605_v13 }
  0x64   : > { %v1917_v25 = vcombine.low %v923_v20, %v937_v16 }
  0x67   : > { %2123 = vmatmul.mubr.msk.bf16.gmra.mrb[4].mxu1 %vm345_vm3, %v2288_v57 }
  0x68   : > { %2132 = vmatprep.mubr.msk.bf16.mxu1 %vm345_vm3, %v1916_v58 }
  0x69   : > { %2169 = vmatmul.mubr.msk.bf16.vlgmr.msra.gmra.mrb[0].mxu0 %vm345_vm3, %v2007_v61 }
  0x6a   : > { %2172 = vmatprep.mubr.msk.bf16.mxu0 %vm345_vm3, %v2008_v56 }
  0x71   : > { %2173 = vmatmul.mubr.msk.bf16.gmra.mrb[4].mxu0 %vm345_vm3, %v2009_v23 }
  0x73   : > { %2133 = vmatmul.mubr.msk.bf16.vlgmr.msra.gmra.mrb[4].mxu1 %vm345_vm3, %v1917_v25 }
 0x132   : > { %v2120_v48 = vpop.f32.mrb[0].mxu1 }
 0x133   : > { %v771_v8 = vpop.f32.mrb[1].mxu1 }
 0x134   : > { %v2121_v24 = vpop.f32.mrb[2].mxu1 }
 0x135   : > { %v774_v9 = vpop.f32.mrb[3].mxu1 }
 0x13c   : > { %v2170_v27 = vpop.f32.mrb[0].mxu0 }
 0x13d   : > { %v2178_v28 = vadd.f32 %v2170_v27, %v2120_v48  ;;  %v1669_v63 = vpop.f32.mrb[1].mxu0 }
 0x13e   : > { %v2179_v32 = vadd.f32 %v1669_v63, %v771_v8  ;;  %v2171_v30 = vpop.f32.mrb[2].mxu0 }
 0x13f   : > { %v1717_v22 = vadd.f32 %v2178_v28, %v2014_v53  ;;  %v2180_v5 = vadd.f32 %v2171_v30, %v2121_v24  ;;  %v1672_v47 = vpop.f32.mrb[3].mxu0 }
 0x140   : > { %v1715_v34 = vadd.f32 %v2179_v32, %v2014_v53  ;;  %v2181_v35 = vadd.f32 %v1672_v47, %v774_v9 }
 0x141   : > { %v1718_v44 = vadd.f32 %v2180_v5, %v2014_v53  ;;  %v1725_v38 = vmax.f32 %v1717_v22, 0.0 }
 0x142   : > { %v1716_v42 = vadd.f32 %v2181_v35, %v2014_v53  ;;  %v1723_v12 = vmax.f32 %v1715_v34, 0.0 }
 0x143   : > { %v1726_v40 = vmax.f32 %v1718_v44, 0.0 }
 0x144   : > { %v1724_v29 = vmax.f32 %v1716_v42, 0.0  ;;  %v2174_v50 = vpop.f32.mrb[4].mxu0 }
 0x145   : > { %v2026_v37 = vpack.c.bf16 %v1726_v40, %v1725_v38  ;;  %v1685_v41 = vpop.f32.mrb[5].mxu0 }
 0x146   : > { %v2021_v54 = vpack.c.bf16 %v1724_v29, %v1723_v12  ;;  %v2134_v62 = vpop.f32.mrb[4].mxu1  ;;  %v2175_v33 = vpop.f32.mrb[6].mxu0 }
 0x147   : > { %2038 = vst [vmem:[%s192_s20 + $0x8] sm:$0xff] %v2026_v37   ;;  %v2182_v26 = vadd.f32 %v2174_v50, %v2134_v62  ;;  %v1017_v2 = vpop.f32.mrb[5].mxu1  ;;  %v1688_v36 = vpop.f32.mrb[7].mxu0 }
 0x148   : > { %2022 = vst [vmem:[%s192_s20] sm:$0xff] %v2021_v54   ;;  %v2183_v15 = vadd.f32 %v1685_v41, %v1017_v2  ;;  %v2135_v55 = vpop.f32.mrb[6].mxu1 }
 0x149   : > { %v1721_v49 = vadd.f32 %v2182_v26, %v2014_v53  ;;  %v2184_v45 = vadd.f32 %v2175_v33, %v2135_v55  ;;  %v1020_v52 = vpop.f32.mrb[7].mxu1 }
 0x14a   : > { %v1719_v17 = vadd.f32 %v2183_v15, %v2014_v53  ;;  %v2185_v21 = vadd.f32 %v1688_v36, %v1020_v52 }
 0x14b   : > { %v1722_v3 = vadd.f32 %v2184_v45, %v2014_v53  ;;  %v1729_v1 = vmax.f32 %v1721_v49, 0.0 }
 0x14c   : > { %v1720_v11 = vadd.f32 %v2185_v21, %v2014_v53  ;;  %v1727_v57 = vmax.f32 %v1719_v17, 0.0 }
 0x14d   : > { %v1730_v31 = vmax.f32 %v1722_v3, 0.0 }
 0x14e   : > { %v1728_v6 = vmax.f32 %v1720_v11, 0.0 }
 0x14f   : > { %v2036_v7 = vpack.c.bf16 %v1730_v31, %v1729_v1 }
 0x150   : > { %v2031_v43 = vpack.c.bf16 %v1728_v6, %v1727_v57 }
 0x151   : > { %2040 = vst [vmem:[%s192_s20 + $0x18] sm:$0xff] %v2036_v7  }
 0x152   : > { %2039 = vst [vmem:[%s192_s20 + $0x10] sm:$0xff] %v2031_v43  }
 0x153 PF: > { %s13_s14 = sadd.s32 1, %s2311_s14   ;;  %s2870_s12 = smov %s2307_s13 }
 0x154   : > { %p10_p5 = scmp.ge.s32.totalorder %s13_s14, 4   ;;  %s2871_s13 = smov %s2873_s15 }
 0x156   :  { %12 = sbr.rel (!%p10_p5) target bundleno = 2 (0x2), region = 73 }

</bundles_post_ra>
